<compile_context>
chip_gen: v7x
topology: tpu7x:2x2x1
jax: 0.10.0
libtpu: 0.0.40
codegen_flags: <defaults>
</compile_context>

<pallas_src>
import math
import functools

import jax
import jax.numpy as jnp
from jax import lax
from jax.experimental import pallas as pl
from jax.experimental.pallas import tpu as pltpu


# ---------------------------------------------------------------------------
# Slab-group selection
# ---------------------------------------------------------------------------

def _choose_group(S, nodes, hid, *, budget_bytes=10 << 20, max_group=1024):
    """Pick the slab-group size G (second-to-last input block dim).

    Largest multiple of 8 that divides S, fits a conservative per-step VMEM
    working-set budget (safe for v7x's smaller 64 MiB VMEM / 32 MiB scoped
    default), and -- when possible -- keeps the grid length >= 2 so megacore
    splitting and input/output double-buffering stay effective.
    """
    per_slab = nodes * (4 * hid * 4        # f32 fused projection
                        + 8 * hid * 2      # bf16 q/k/v/p copies + in/out blocks
                        + 3 * hid * 4      # agg / h / y (f32)
                        + 3 * nodes * 4)   # s / e / p score matrices (f32)
    cap = max(8, min(max_group, budget_bytes // max(per_slab, 1)))
    cap -= cap % 8
    best_multi = best_single = None
    g = 8
    while g <= min(S, cap):
        if S % g == 0:
            best_single = g
            if S // g >= 2:
                best_multi = g
        g += 8
    if best_multi is not None:
        return best_multi
    if best_single is not None:
        return best_single
    # TODO(synk): pad the slab axis when S has no multiple-of-8 divisor <= cap.
    return S


# ---------------------------------------------------------------------------
# Kernel 1/2: fused Att_Net layer
#   fused q|k|v|skip projection -> per-slab attention -> residual skip ->
#   LayerNorm -> ELU, per grid step over a group of G independent slabs.
# ---------------------------------------------------------------------------

def _fused_att_net_kernel(x_ref, w_ref, b_ref, g_ref, be_ref, o_ref, *,
                          hid, scale, eps):
    nodes, G, cin = x_ref.shape

    # Cheap relayout of the *narrow* (cin <= hid lanes) input to slab-major so the
    # fused projection lands directly in the layout the batched attention wants.
    x_sm = jnp.transpose(x_ref[...], (1, 0, 2)).reshape(G * nodes, cin)

    # fused q|k|v|skip projection: (G*nodes, cin) @ (cin, 4*hid=128) on the MXU,
    # bf16 inputs (weights pre-cast on the host), f32 accumulation.
    proj = jnp.dot(x_sm, w_ref[...], preferred_element_type=jnp.float32) + b_ref[...]
    proj = proj.reshape(G, nodes, 4 * hid)                  # slab-major, free split

    q = proj[..., 0 * hid:1 * hid]
    k = proj[..., 1 * hid:2 * hid]
    v = proj[..., 2 * hid:3 * hid]
    skip = proj[..., 3 * hid:4 * hid]
    qb = q.astype(jnp.bfloat16)
    kb = k.astype(jnp.bfloat16)
    vb = v.astype(jnp.bfloat16)

    # scores s[g, m, n] = <key_m, query_n> / sqrt(hid), batched over slabs g.
    s = lax.dot_general(kb, qb, (((2,), (2,)), ((0,), (0,))),
                        preferred_element_type=jnp.float32) * scale
    # PyG softmax(alpha, edge_index[0]) groups by the SOURCE node m, i.e. the
    # normalisation runs over the target axis n (last axis). Exact divide for
    # numerical parity with torch.softmax.
    s = s - jnp.max(s, axis=2, keepdims=True)
    e = jnp.exp(s)
    p = e / jnp.sum(e, axis=2, keepdims=True)

    # aggregation at target (aggr='add'): agg[g, n, c] = sum_m p[g, m, n] * v[g, m, c]
    agg = lax.dot_general(p.astype(jnp.bfloat16), vb, (((1,), (1,)), ((0,), (0,))),
                          preferred_element_type=jnp.float32)

    h = agg + skip                                          # residual skip (f32)

    # LayerNorm(hid) (torch defaults) + ELU(alpha=1), f32 math.
    mu = jnp.mean(h, axis=-1, keepdims=True)
    var = jnp.mean((h - mu) * (h - mu), axis=-1, keepdims=True)
    y = (h - mu) * lax.rsqrt(var + eps) * g_ref[...] + be_ref[...]
    y = jnp.where(y > 0, y, jnp.exp(jnp.minimum(y, 0.0)) - 1.0)

    # node-major + lane-dense store: (G, nodes, hid) -> (nodes, G*hid) bf16 so the
    # write-back is full-width vst instead of hid=32 masked partial stores.
    y_nm = jnp.transpose(y.astype(jnp.bfloat16), (1, 0, 2))
    o_ref[...] = y_nm.reshape(nodes, G * hid)


def att_net_fused(x_node_major, w_qkvs_bf16, b_qkvs, ln_g, ln_b, *, hid):
    """Fused Att_Net over a node-major slab tensor.

    x_node_major : (nodes, S, cin) bf16; row [node, s] is flat row node*S + s of
                   the contiguous (B, T, N, cin) activation, i.e. exactly the torch
                   `.view(N, B, T, C)` buffer reinterpretation.
    returns      : (nodes, S, hid) bf16 in the same node-major flat-row layout, so
                   a plain (free) reshape recovers the (B, T, N, hid) output.
    """
    nodes, S, cin = x_node_major.shape
    G = _choose_group(S, nodes, hid)
    grid = (S // G,)
    kern = functools.partial(_fused_att_net_kernel, hid=hid,
                             scale=1.0 / math.sqrt(hid), eps=1e-5)
    out = pl.pallas_call(
        kern,
        out_shape=jax.ShapeDtypeStruct((nodes, S * hid), jnp.bfloat16),
        grid=grid,
        in_specs=[
            # TODO(synk): consider a lane-dense (nodes, G*cin) input spec as well;
            # the in-kernel unpack relayout may eat the DMA gain at cin=8/32.
            pl.BlockSpec((nodes, G, cin), lambda i: (0, i, 0)),
            pl.BlockSpec((cin, 4 * hid), lambda i: (0, 0)),   # resident bf16 weights
            pl.BlockSpec((1, 4 * hid), lambda i: (0, 0)),
            pl.BlockSpec((1, hid), lambda i: (0, 0)),
            pl.BlockSpec((1, hid), lambda i: (0, 0)),
        ],
        out_specs=pl.BlockSpec((nodes, G * hid), lambda i: (0, i)),
        compiler_params=pltpu.CompilerParams(
            dimension_semantics=("parallel",)),      # lets v7x split over 2 TCs
    )(x_node_major, w_qkvs_bf16, b_qkvs, ln_g, ln_b)
    return out.reshape(nodes, S, hid)


# ---------------------------------------------------------------------------
# Kernel 3: fused tail -- per-batch (temporal mean pool + entity->squad mean
# pool) as one (num_squads, N*T) pooling matmul + classifier Linear + Sigmoid,
# gridded over the batch axis (no O(B^2) block-diagonal pooling matrix).
# ---------------------------------------------------------------------------

def _pool_classifier_kernel(h_ref, p_ref, w_ref, b_ref, o_ref):
    pooled = jnp.dot(p_ref[...], h_ref[...], preferred_element_type=jnp.float32)
    z = jnp.dot(pooled, w_ref[...], preferred_element_type=jnp.float32) + b_ref[...]
    o_ref[...] = 1.0 / (1.0 + jnp.exp(-z))


def pool_classifier_pallas(h_batched, pool_b, clf_w, clf_b):
    B, NT, hid = h_batched.shape
    Sq = pool_b.shape[0]
    out_c = clf_w.shape[1]
    return pl.pallas_call(
        _pool_classifier_kernel,
        out_shape=jax.ShapeDtypeStruct((B, Sq, out_c), jnp.float32),
        grid=(B,),
        in_specs=[pl.BlockSpec((None, NT, hid), lambda b: (b, 0, 0)),
                  pl.BlockSpec((Sq, NT), lambda b: (0, 0)),
                  pl.BlockSpec((hid, out_c), lambda b: (0, 0)),
                  pl.BlockSpec((1, out_c), lambda b: (0, 0))],
        out_specs=pl.BlockSpec((None, Sq, out_c), lambda b: (b, 0, 0)),
        compiler_params=pltpu.CompilerParams(
            dimension_semantics=("parallel",)),
    )(h_batched, pool_b, clf_w, clf_b)


# ---------------------------------------------------------------------------
# Model glue (only free reshapes, one small bf16 transpose, constant matrices)
# ---------------------------------------------------------------------------

def positional_encoding(t_len, d_model):
    # TODO(synk): PositionalEncoding source not provided; standard sinusoidal PE assumed.
    position = jnp.arange(t_len, dtype=jnp.float32)[:, None]
    div_term = jnp.exp(jnp.arange(0, d_model, 2, dtype=jnp.float32)
                       * (-math.log(10000.0) / d_model))
    pe = jnp.zeros((t_len, d_model), jnp.float32)
    pe = pe.at[:, 0::2].set(jnp.sin(position * div_term))
    pe = pe.at[:, 1::2].set(jnp.cos(position * div_term))
    return pe


def spatio_temporal_att_forward(x, entity2squad_idx, num_squads, params, hid):
    B, T, N, C = x.shape
    pos = params['pos']                                               # (T, pos_dim)
    pe = jnp.broadcast_to(pos[None, :, None, :], (B, T, N, pos.shape[-1]))
    # activations carried in bf16 end-to-end; softmax/LN/classifier math stays f32.
    x0 = jnp.concatenate([x, pe], axis=-1).astype(jnp.bfloat16)       # (B,T,N,Cin0)
    cin0 = x0.shape[-1]

    # --- spatial attention over the N entities ---------------------------------
    # torch `.view(N, B, T, C)` == node-major reinterpretation of the contiguous
    # (B, T, N, C) buffer (flat row = node*B*T + slab): a plain reshape gives it.
    x0_nm = x0.reshape(N, B * T, cin0)
    p0 = params['att0']
    h0 = att_net_fused(x0_nm, p0['w_qkvs'].astype(jnp.bfloat16), p0['b_qkvs'],
                       p0['ln_g'], p0['ln_b'], hid=hid)               # (N, B*T, hid)
    x1 = h0.reshape(B, T, N, hid)                                     # free reshape

    # --- temporal attention over T ---------------------------------------------
    # The module permutes to (B, N, T, hid) before the second Att_Net. Because the
    # `.view` scrambling is defined w.r.t. the *contiguous* permuted buffer, the
    # permutation cannot be folded into a rectangular BlockSpec index_map; one
    # (now bf16, half-sized) XLA transpose of the activation remains here.
    x1_nm = jnp.transpose(x1, (0, 2, 1, 3)).reshape(T, B * N, hid)
    p1 = params['att1']
    h1 = att_net_fused(x1_nm, p1['w_qkvs'].astype(jnp.bfloat16), p1['b_qkvs'],
                       p1['ln_g'], p1['ln_b'], hid=hid)               # (T, B*N, hid)
    # node-major memory == contiguous (B, N, T, hid) layer-1 output
    h_batched = h1.reshape(B, N * T, hid)

    # --- temp_pool + entity2squad_pool + classifier, fused, gridded over B ------
    # TODO(synk): temp_pool / entity2squad_pool sources not provided; mean pooling
    # over time and segment-mean over entities->squads assumed, expressed as one
    # (num_squads, N*T) per-batch pooling matrix.
    onehot = jax.nn.one_hot(entity2squad_idx, num_squads, dtype=jnp.float32)  # (N,S)
    counts = jnp.maximum(jnp.sum(onehot, axis=0), 1.0)
    squad_mat = (onehot / counts[None, :]).T                                  # (S,N)
    pool_b = jnp.kron(squad_mat, jnp.full((1, T), 1.0 / T, jnp.float32))      # (S,N*T)
    int_prob = pool_classifier_pallas(h_batched, pool_b.astype(jnp.bfloat16),
                                      params['clf_w'], params['clf_b'])
    # args.pred == 'y_int' -> the 'y_atk' branch is config-disabled.
    atk_prob = None
    return int_prob, atk_prob


# ---------------------------------------------------------------------------
# Deterministic parameter initialization (shapes follow the module's __init__)
# ---------------------------------------------------------------------------

def _init_linear(key, fan_in, fan_out):
    k1, k2 = jax.random.split(key)
    bound = 1.0 / math.sqrt(fan_in)
    w = jax.random.uniform(k1, (fan_in, fan_out), jnp.float32, -bound, bound)
    b = jax.random.uniform(k2, (fan_out,), jnp.float32, -bound, bound)
    return w, b


def init_params(key, in_channels, hid, out_channels, t_sample_size, pos_dim=4):
    keys = jax.random.split(key, 9)

    def att_params(ks, cin):
        wq, bq = _init_linear(ks[0], cin, hid)
        wk, bk = _init_linear(ks[1], cin, hid)
        wv, bv = _init_linear(ks[2], cin, hid)
        ws, bs = _init_linear(ks[3], cin, hid)
        return {'w_qkvs': jnp.concatenate([wq, wk, wv, ws], axis=1),   # (cin, 4*hid)
                'b_qkvs': jnp.concatenate([bq, bk, bv, bs]).reshape(1, 4 * hid),
                'ln_g': jnp.ones((1, hid), jnp.float32),
                'ln_b': jnp.zeros((1, hid), jnp.float32)}

    p0 = att_params(keys[0:4], in_channels + pos_dim)
    p1 = att_params(keys[4:8], hid)
    clf_w, clf_b = _init_linear(keys[8], hid, out_channels)
    return {'att0': p0, 'att1': p1,
            'clf_w': clf_w, 'clf_b': clf_b.reshape(1, out_channels),
            'pos': positional_encoding(t_sample_size, pos_dim)}


# ---------------------------------------------------------------------------

if __name__ == "__main__":
    B, T, N, C = 2, 8, 4, 4        # batch, t_sample_size, num_entities, input features
    HID = 32                        # args.hid_dim
    OUT = 3                         # classifier out_channels
    NUM_SQUADS = 2

    key = jax.random.PRNGKey(0)
    kx, kp = jax.random.split(key)
    x = jax.random.normal(kx, (B, T, N, C), jnp.float32)
    entity2squad_idx = jnp.array([0, 0, 1, 1], dtype=jnp.int32)   # 4 entities -> 2 squads

    params = init_params(kp, C, HID, OUT, T)

    fwd = jax.jit(lambda xx, e2s, prm: spatio_temporal_att_forward(
        xx, e2s, NUM_SQUADS, prm, HID))

    int_prob, atk_prob = fwd(x, entity2squad_idx, params)
    jax.block_until_ready(int_prob)

    assert int_prob.shape == (B, NUM_SQUADS, OUT)
    assert atk_prob is None
    assert bool(jnp.all(jnp.isfinite(int_prob)))
    assert bool(jnp.all((int_prob >= 0.0) & (int_prob <= 1.0)))
    print("KERNEL_OK")
</pallas_src>

<mosaic_0001>
module attributes {stable_mosaic.version = 11 : i64} {
  func.func @_fused_att_net_kernel(%arg0: i32, %arg1: memref<4x8x8xbf16, #tpu.memory_space<vmem>>, %arg2: memref<8x128xbf16, #tpu.memory_space<vmem>>, %arg3: memref<1x128xf32, #tpu.memory_space<vmem>>, %arg4: memref<1x32xf32, #tpu.memory_space<vmem>>, %arg5: memref<1x32xf32, #tpu.memory_space<vmem>>, %arg6: memref<4x256xbf16, #tpu.memory_space<vmem>>) attributes {dimension_semantics = [#tpu.dimension_semantics<parallel>], iteration_bounds = array<i64: 2>, scalar_prefetch = 0 : i64, scratch_operands = 0 : i64, tpu.core_type = #tpu.core_type<tc>, window_params = [{transform_indices = @transform_0, window_bounds = array<i64: 4, 8, 8>}, {pipeline_mode = #tpu.pipeline_mode<synchronous>, transform_indices = @transform_1, window_bounds = array<i64: 8, 128>}, {pipeline_mode = #tpu.pipeline_mode<synchronous>, transform_indices = @transform_2, window_bounds = array<i64: 1, 128>}, {pipeline_mode = #tpu.pipeline_mode<synchronous>, transform_indices = @transform_3, window_bounds = array<i64: 1, 32>}, {pipeline_mode = #tpu.pipeline_mode<synchronous>, transform_indices = @transform_4, window_bounds = array<i64: 1, 32>}, {transform_indices = @transform_5, window_bounds = array<i64: 4, 256>}]} {
    %c0 = arith.constant 0 : index
    %c0_0 = arith.constant 0 : index
    %c0_1 = arith.constant 0 : index
    %0 = vector.load %arg1[%c0, %c0_0, %c0_1] : memref<4x8x8xbf16, #tpu.memory_space<vmem>>, vector<4x8x8xbf16>
    %1 = tpu.transpose %0, [1, 0, 2] : vector<4x8x8xbf16> -> vector<8x4x8xbf16>
    %2 = vector.shape_cast %1 : vector<8x4x8xbf16> to vector<32x8xbf16>
    %c0_2 = arith.constant 0 : index
    %c0_3 = arith.constant 0 : index
    %3 = vector.load %arg2[%c0_2, %c0_3] : memref<8x128xbf16, #tpu.memory_space<vmem>>, vector<8x128xbf16>
    %cst = arith.constant dense<0.000000e+00> : vector<32x128xf32>
    %4 = tpu.matmul %2, %3, %cst {dimension_numbers = #tpu.dot_dimension_numbers<[1], [0], [0], [1], [0, 0, 1, 1], [], []>} : vector<32x8xbf16>, vector<8x128xbf16>, vector<32x128xf32> -> vector<32x128xf32>
    %c0_4 = arith.constant 0 : index
    %c0_5 = arith.constant 0 : index
    %5 = vector.load %arg3[%c0_4, %c0_5] : memref<1x128xf32, #tpu.memory_space<vmem>>, vector<1x128xf32>
    %6 = vector.broadcast %5 : vector<1x128xf32> to vector<32x128xf32>
    %7 = arith.addf %4, %6 : vector<32x128xf32>
    %8 = vector.shape_cast %7 : vector<32x128xf32> to vector<8x4x128xf32>
    %9 = vector.extract_strided_slice %8 {offsets = [0, 0, 0], sizes = [8, 4, 32], strides = [1, 1, 1]} : vector<8x4x128xf32> to vector<8x4x32xf32>
    %10 = vector.extract_strided_slice %8 {offsets = [0, 0, 32], sizes = [8, 4, 32], strides = [1, 1, 1]} : vector<8x4x128xf32> to vector<8x4x32xf32>
    %11 = vector.extract_strided_slice %8 {offsets = [0, 0, 64], sizes = [8, 4, 32], strides = [1, 1, 1]} : vector<8x4x128xf32> to vector<8x4x32xf32>
    %12 = vector.extract_strided_slice %8 {offsets = [0, 0, 96], sizes = [8, 4, 32], strides = [1, 1, 1]} : vector<8x4x128xf32> to vector<8x4x32xf32>
    %13 = arith.truncf %9 : vector<8x4x32xf32> to vector<8x4x32xbf16>
    %14 = arith.truncf %10 : vector<8x4x32xf32> to vector<8x4x32xbf16>
    %15 = arith.truncf %11 : vector<8x4x32xf32> to vector<8x4x32xbf16>
    %cst_6 = arith.constant dense<0.000000e+00> : vector<8x4x4xf32>
    %16 = tpu.matmul %14, %13, %cst_6 {dimension_numbers = #tpu.dot_dimension_numbers<[2], [2], [1], [1], [0, 0, 0, 1, 1, 1], [0], [0]>} : vector<8x4x32xbf16>, vector<8x4x32xbf16>, vector<8x4x4xf32> -> vector<8x4x4xf32>
    %cst_7 = arith.constant 0.176776692 : f32
    %17 = vector.broadcast %cst_7 : f32 to vector<8x4x4xf32>
    %18 = arith.mulf %16, %17 : vector<8x4x4xf32>
    %cst_8 = arith.constant dense<0xFF800000> : vector<8x4xf32>
    %19 = vector.multi_reduction <maximumf>, %18, %cst_8 [2] : vector<8x4x4xf32> to vector<8x4xf32>
    %20 = vector.shape_cast %19 : vector<8x4xf32> to vector<8x4x1xf32>
    %21 = vector.broadcast %20 : vector<8x4x1xf32> to vector<8x4x4xf32>
    %22 = arith.subf %18, %21 : vector<8x4x4xf32>
    %23 = math.exp %22 : vector<8x4x4xf32>
    %cst_9 = arith.constant dense<0.000000e+00> : vector<8x4xf32>
    %24 = vector.multi_reduction <add>, %23, %cst_9 [2] : vector<8x4x4xf32> to vector<8x4xf32>
    %25 = vector.shape_cast %24 : vector<8x4xf32> to vector<8x4x1xf32>
    %26 = vector.broadcast %25 : vector<8x4x1xf32> to vector<8x4x4xf32>
    %27 = arith.divf %23, %26 : vector<8x4x4xf32>
    %28 = arith.truncf %27 : vector<8x4x4xf32> to vector<8x4x4xbf16>
    %cst_10 = arith.constant dense<0.000000e+00> : vector<8x4x32xf32>
    %29 = tpu.matmul %28, %15, %cst_10 {dimension_numbers = #tpu.dot_dimension_numbers<[1], [1], [2], [2], [0, 0, 0, 2, 1, 2], [0], [0]>} : vector<8x4x4xbf16>, vector<8x4x32xbf16>, vector<8x4x32xf32> -> vector<8x4x32xf32>
    %30 = arith.addf %29, %12 : vector<8x4x32xf32>
    %cst_11 = arith.constant dense<0.000000e+00> : vector<8x4xf32>
    %31 = vector.multi_reduction <add>, %30, %cst_11 [2] : vector<8x4x32xf32> to vector<8x4xf32>
    %32 = vector.shape_cast %31 : vector<8x4xf32> to vector<8x4x1xf32>
    %cst_12 = arith.constant 3.200000e+01 : f32
    %33 = vector.broadcast %cst_12 : f32 to vector<8x4x1xf32>
    %34 = arith.divf %32, %33 : vector<8x4x1xf32>
    %35 = vector.broadcast %34 : vector<8x4x1xf32> to vector<8x4x32xf32>
    %36 = arith.subf %30, %35 : vector<8x4x32xf32>
    %37 = vector.broadcast %34 : vector<8x4x1xf32> to vector<8x4x32xf32>
    %38 = arith.subf %30, %37 : vector<8x4x32xf32>
    %39 = arith.mulf %36, %38 : vector<8x4x32xf32>
    %cst_13 = arith.constant dense<0.000000e+00> : vector<8x4xf32>
    %40 = vector.multi_reduction <add>, %39, %cst_13 [2] : vector<8x4x32xf32> to vector<8x4xf32>
    %41 = vector.shape_cast %40 : vector<8x4xf32> to vector<8x4x1xf32>
    %cst_14 = arith.constant 3.200000e+01 : f32
    %42 = vector.broadcast %cst_14 : f32 to vector<8x4x1xf32>
    %43 = arith.divf %41, %42 : vector<8x4x1xf32>
    %44 = vector.broadcast %34 : vector<8x4x1xf32> to vector<8x4x32xf32>
    %45 = arith.subf %30, %44 : vector<8x4x32xf32>
    %cst_15 = arith.constant 9.99999974E-6 : f32
    %46 = vector.broadcast %cst_15 : f32 to vector<8x4x1xf32>
    %47 = arith.addf %43, %46 : vector<8x4x1xf32>
    %48 = math.rsqrt %47 : vector<8x4x1xf32>
    %49 = vector.broadcast %48 : vector<8x4x1xf32> to vector<8x4x32xf32>
    %50 = arith.mulf %45, %49 : vector<8x4x32xf32>
    %c0_16 = arith.constant 0 : index
    %c0_17 = arith.constant 0 : index
    %51 = vector.load %arg4[%c0_16, %c0_17] : memref<1x32xf32, #tpu.memory_space<vmem>>, vector<1x32xf32>
    %52 = vector.shape_cast %51 : vector<1x32xf32> to vector<1x1x32xf32>
    %53 = vector.broadcast %52 : vector<1x1x32xf32> to vector<8x4x32xf32>
    %54 = arith.mulf %50, %53 : vector<8x4x32xf32>
    %c0_18 = arith.constant 0 : index
    %c0_19 = arith.constant 0 : index
    %55 = vector.load %arg5[%c0_18, %c0_19] : memref<1x32xf32, #tpu.memory_space<vmem>>, vector<1x32xf32>
    %56 = vector.shape_cast %55 : vector<1x32xf32> to vector<1x1x32xf32>
    %57 = vector.broadcast %56 : vector<1x1x32xf32> to vector<8x4x32xf32>
    %58 = arith.addf %54, %57 : vector<8x4x32xf32>
    %cst_20 = arith.constant 0.000000e+00 : f32
    %59 = vector.broadcast %cst_20 : f32 to vector<8x4x32xf32>
    %60 = arith.cmpf ogt, %58, %59 : vector<8x4x32xf32>
    %cst_21 = arith.constant 0.000000e+00 : f32
    %61 = vector.broadcast %cst_21 : f32 to vector<8x4x32xf32>
    %62 = arith.minimumf %58, %61 : vector<8x4x32xf32>
    %63 = math.exp %62 : vector<8x4x32xf32>
    %cst_22 = arith.constant 1.000000e+00 : f32
    %64 = vector.broadcast %cst_22 : f32 to vector<8x4x32xf32>
    %65 = arith.subf %63, %64 : vector<8x4x32xf32>
    %66 = arith.select %60, %58, %65 : vector<8x4x32xi1>, vector<8x4x32xf32>
    %67 = arith.truncf %66 : vector<8x4x32xf32> to vector<8x4x32xbf16>
    %68 = tpu.transpose %67, [1, 0, 2] : vector<8x4x32xbf16> -> vector<4x8x32xbf16>
    %69 = vector.shape_cast %68 : vector<4x8x32xbf16> to vector<4x256xbf16>
    %c0_23 = arith.constant 0 : index
    %c0_24 = arith.constant 0 : index
    %70 = vector.load %arg6[%c0_23, %c0_24] : memref<4x256xbf16, #tpu.memory_space<vmem>>, vector<4x256xbf16>
    tpu.vector_store %arg6[%c0_23, %c0_24], %69 {strides = array<i32>} : memref<4x256xbf16, #tpu.memory_space<vmem>>, vector<4x256xbf16>,
    return
  }
  func.func @transform_0(%arg0: i32) -> (i32, i32, i32) {
    %c0_i32 = arith.constant 0 : i32
    %c0_i32_0 = arith.constant 0 : i32
    %c0_i32_1 = arith.constant 0 : i32
    return %c0_i32, %arg0, %c0_i32_0 : i32, i32, i32
  }
  func.func @transform_1(%arg0: i32) -> (i32, i32) {
    %c0_i32 = arith.constant 0 : i32
    %c0_i32_0 = arith.constant 0 : i32
    %c0_i32_1 = arith.constant 0 : i32
    return %c0_i32, %c0_i32_0 : i32, i32
  }
  func.func @transform_2(%arg0: i32) -> (i32, i32) {
    %c0_i32 = arith.constant 0 : i32
    %c0_i32_0 = arith.constant 0 : i32
    %c0_i32_1 = arith.constant 0 : i32
    return %c0_i32, %c0_i32_0 : i32, i32
  }
  func.func @transform_3(%arg0: i32) -> (i32, i32) {
    %c0_i32 = arith.constant 0 : i32
    %c0_i32_0 = arith.constant 0 : i32
    %c0_i32_1 = arith.constant 0 : i32
    return %c0_i32, %c0_i32_0 : i32, i32
  }
  func.func @transform_4(%arg0: i32) -> (i32, i32) {
    %c0_i32 = arith.constant 0 : i32
    %c0_i32_0 = arith.constant 0 : i32
    %c0_i32_1 = arith.constant 0 : i32
    return %c0_i32, %c0_i32_0 : i32, i32
  }
  func.func @transform_5(%arg0: i32) -> (i32, i32) {
    %c0_i32 = arith.constant 0 : i32
    %c0_i32_0 = arith.constant 0 : i32
    return %c0_i32, %arg0 : i32, i32
  }
}

module attributes {stable_mosaic.version = 11 : i64} {
  func.func @_fused_att_net_kernel(%arg0: i32, %arg1: memref<8x8x32xbf16, #tpu.memory_space<vmem>>, %arg2: memref<32x128xbf16, #tpu.memory_space<vmem>>, %arg3: memref<1x128xf32, #tpu.memory_space<vmem>>, %arg4: memref<1x32xf32, #tpu.memory_space<vmem>>, %arg5: memref<1x32xf32, #tpu.memory_space<vmem>>, %arg6: memref<8x256xbf16, #tpu.memory_space<vmem>>) attributes {dimension_semantics = [#tpu.dimension_semantics<parallel>], iteration_bounds = array<i64: 1>, scalar_prefetch = 0 : i64, scratch_operands = 0 : i64, tpu.core_type = #tpu.core_type<tc>, window_params = [{transform_indices = @transform_0, window_bounds = array<i64: 8, 8, 32>}, {pipeline_mode = #tpu.pipeline_mode<synchronous>, transform_indices = @transform_1, window_bounds = array<i64: 32, 128>}, {pipeline_mode = #tpu.pipeline_mode<synchronous>, transform_indices = @transform_2, window_bounds = array<i64: 1, 128>}, {pipeline_mode = #tpu.pipeline_mode<synchronous>, transform_indices = @transform_3, window_bounds = array<i64: 1, 32>}, {pipeline_mode = #tpu.pipeline_mode<synchronous>, transform_indices = @transform_4, window_bounds = array<i64: 1, 32>}, {transform_indices = @transform_5, window_bounds = array<i64: 8, 256>}]} {
    %c0 = arith.constant 0 : index
    %c0_0 = arith.constant 0 : index
    %c0_1 = arith.constant 0 : index
    %0 = vector.load %arg1[%c0, %c0_0, %c0_1] : memref<8x8x32xbf16, #tpu.memory_space<vmem>>, vector<8x8x32xbf16>
    %1 = tpu.transpose %0, [1, 0, 2] : vector<8x8x32xbf16> -> vector<8x8x32xbf16>
    %2 = vector.shape_cast %1 : vector<8x8x32xbf16> to vector<64x32xbf16>
    %c0_2 = arith.constant 0 : index
    %c0_3 = arith.constant 0 : index
    %3 = vector.load %arg2[%c0_2, %c0_3] : memref<32x128xbf16, #tpu.memory_space<vmem>>, vector<32x128xbf16>
    %cst = arith.constant dense<0.000000e+00> : vector<64x128xf32>
    %4 = tpu.matmul %2, %3, %cst {dimension_numbers = #tpu.dot_dimension_numbers<[1], [0], [0], [1], [0, 0, 1, 1], [], []>} : vector<64x32xbf16>, vector<32x128xbf16>, vector<64x128xf32> -> vector<64x128xf32>
    %c0_4 = arith.constant 0 : index
    %c0_5 = arith.constant 0 : index
    %5 = vector.load %arg3[%c0_4, %c0_5] : memref<1x128xf32, #tpu.memory_space<vmem>>, vector<1x128xf32>
    %6 = vector.broadcast %5 : vector<1x128xf32> to vector<64x128xf32>
    %7 = arith.addf %4, %6 : vector<64x128xf32>
    %8 = vector.shape_cast %7 : vector<64x128xf32> to vector<8x8x128xf32>
    %9 = vector.extract_strided_slice %8 {offsets = [0, 0, 0], sizes = [8, 8, 32], strides = [1, 1, 1]} : vector<8x8x128xf32> to vector<8x8x32xf32>
    %10 = vector.extract_strided_slice %8 {offsets = [0, 0, 32], sizes = [8, 8, 32], strides = [1, 1, 1]} : vector<8x8x128xf32> to vector<8x8x32xf32>
    %11 = vector.extract_strided_slice %8 {offsets = [0, 0, 64], sizes = [8, 8, 32], strides = [1, 1, 1]} : vector<8x8x128xf32> to vector<8x8x32xf32>
    %12 = vector.extract_strided_slice %8 {offsets = [0, 0, 96], sizes = [8, 8, 32], strides = [1, 1, 1]} : vector<8x8x128xf32> to vector<8x8x32xf32>
    %13 = arith.truncf %9 : vector<8x8x32xf32> to vector<8x8x32xbf16>
    %14 = arith.truncf %10 : vector<8x8x32xf32> to vector<8x8x32xbf16>
    %15 = arith.truncf %11 : vector<8x8x32xf32> to vector<8x8x32xbf16>
    %cst_6 = arith.constant dense<0.000000e+00> : vector<8x8x8xf32>
    %16 = tpu.matmul %14, %13, %cst_6 {dimension_numbers = #tpu.dot_dimension_numbers<[2], [2], [1], [1], [0, 0, 0, 1, 1, 1], [0], [0]>} : vector<8x8x32xbf16>, vector<8x8x32xbf16>, vector<8x8x8xf32> -> vector<8x8x8xf32>
    %cst_7 = arith.constant 0.176776692 : f32
    %17 = vector.broadcast %cst_7 : f32 to vector<8x8x8xf32>
    %18 = arith.mulf %16, %17 : vector<8x8x8xf32>
    %cst_8 = arith.constant dense<0xFF800000> : vector<8x8xf32>
    %19 = vector.multi_reduction <maximumf>, %18, %cst_8 [2] : vector<8x8x8xf32> to vector<8x8xf32>
    %20 = vector.shape_cast %19 : vector<8x8xf32> to vector<8x8x1xf32>
    %21 = vector.broadcast %20 : vector<8x8x1xf32> to vector<8x8x8xf32>
    %22 = arith.subf %18, %21 : vector<8x8x8xf32>
    %23 = math.exp %22 : vector<8x8x8xf32>
    %cst_9 = arith.constant dense<0.000000e+00> : vector<8x8xf32>
    %24 = vector.multi_reduction <add>, %23, %cst_9 [2] : vector<8x8x8xf32> to vector<8x8xf32>
    %25 = vector.shape_cast %24 : vector<8x8xf32> to vector<8x8x1xf32>
    %26 = vector.broadcast %25 : vector<8x8x1xf32> to vector<8x8x8xf32>
    %27 = arith.divf %23, %26 : vector<8x8x8xf32>
    %28 = arith.truncf %27 : vector<8x8x8xf32> to vector<8x8x8xbf16>
    %cst_10 = arith.constant dense<0.000000e+00> : vector<8x8x32xf32>
    %29 = tpu.matmul %28, %15, %cst_10 {dimension_numbers = #tpu.dot_dimension_numbers<[1], [1], [2], [2], [0, 0, 0, 2, 1, 2], [0], [0]>} : vector<8x8x8xbf16>, vector<8x8x32xbf16>, vector<8x8x32xf32> -> vector<8x8x32xf32>
    %30 = arith.addf %29, %12 : vector<8x8x32xf32>
    %cst_11 = arith.constant dense<0.000000e+00> : vector<8x8xf32>
    %31 = vector.multi_reduction <add>, %30, %cst_11 [2] : vector<8x8x32xf32> to vector<8x8xf32>
    %32 = vector.shape_cast %31 : vector<8x8xf32> to vector<8x8x1xf32>
    %cst_12 = arith.constant 3.200000e+01 : f32
    %33 = vector.broadcast %cst_12 : f32 to vector<8x8x1xf32>
    %34 = arith.divf %32, %33 : vector<8x8x1xf32>
    %35 = vector.broadcast %34 : vector<8x8x1xf32> to vector<8x8x32xf32>
    %36 = arith.subf %30, %35 : vector<8x8x32xf32>
    %37 = vector.broadcast %34 : vector<8x8x1xf32> to vector<8x8x32xf32>
    %38 = arith.subf %30, %37 : vector<8x8x32xf32>
    %39 = arith.mulf %36, %38 : vector<8x8x32xf32>
    %cst_13 = arith.constant dense<0.000000e+00> : vector<8x8xf32>
    %40 = vector.multi_reduction <add>, %39, %cst_13 [2] : vector<8x8x32xf32> to vector<8x8xf32>
    %41 = vector.shape_cast %40 : vector<8x8xf32> to vector<8x8x1xf32>
    %cst_14 = arith.constant 3.200000e+01 : f32
    %42 = vector.broadcast %cst_14 : f32 to vector<8x8x1xf32>
    %43 = arith.divf %41, %42 : vector<8x8x1xf32>
    %44 = vector.broadcast %34 : vector<8x8x1xf32> to vector<8x8x32xf32>
    %45 = arith.subf %30, %44 : vector<8x8x32xf32>
    %cst_15 = arith.constant 9.99999974E-6 : f32
    %46 = vector.broadcast %cst_15 : f32 to vector<8x8x1xf32>
    %47 = arith.addf %43, %46 : vector<8x8x1xf32>
    %48 = math.rsqrt %47 : vector<8x8x1xf32>
    %49 = vector.broadcast %48 : vector<8x8x1xf32> to vector<8x8x32xf32>
    %50 = arith.mulf %45, %49 : vector<8x8x32xf32>
    %c0_16 = arith.constant 0 : index
    %c0_17 = arith.constant 0 : index
    %51 = vector.load %arg4[%c0_16, %c0_17] : memref<1x32xf32, #tpu.memory_space<vmem>>, vector<1x32xf32>
    %52 = vector.shape_cast %51 : vector<1x32xf32> to vector<1x1x32xf32>
    %53 = vector.broadcast %52 : vector<1x1x32xf32> to vector<8x8x32xf32>
    %54 = arith.mulf %50, %53 : vector<8x8x32xf32>
    %c0_18 = arith.constant 0 : index
    %c0_19 = arith.constant 0 : index
    %55 = vector.load %arg5[%c0_18, %c0_19] : memref<1x32xf32, #tpu.memory_space<vmem>>, vector<1x32xf32>
    %56 = vector.shape_cast %55 : vector<1x32xf32> to vector<1x1x32xf32>
    %57 = vector.broadcast %56 : vector<1x1x32xf32> to vector<8x8x32xf32>
    %58 = arith.addf %54, %57 : vector<8x8x32xf32>
    %cst_20 = arith.constant 0.000000e+00 : f32
    %59 = vector.broadcast %cst_20 : f32 to vector<8x8x32xf32>
    %60 = arith.cmpf ogt, %58, %59 : vector<8x8x32xf32>
    %cst_21 = arith.constant 0.000000e+00 : f32
    %61 = vector.broadcast %cst_21 : f32 to vector<8x8x32xf32>
    %62 = arith.minimumf %58, %61 : vector<8x8x32xf32>
    %63 = math.exp %62 : vector<8x8x32xf32>
    %cst_22 = arith.constant 1.000000e+00 : f32
    %64 = vector.broadcast %cst_22 : f32 to vector<8x8x32xf32>
    %65 = arith.subf %63, %64 : vector<8x8x32xf32>
    %66 = arith.select %60, %58, %65 : vector<8x8x32xi1>, vector<8x8x32xf32>
    %67 = arith.truncf %66 : vector<8x8x32xf32> to vector<8x8x32xbf16>
    %68 = tpu.transpose %67, [1, 0, 2] : vector<8x8x32xbf16> -> vector<8x8x32xbf16>
    %69 = vector.shape_cast %68 : vector<8x8x32xbf16> to vector<8x256xbf16>
    %c0_23 = arith.constant 0 : index
    %c0_24 = arith.constant 0 : index
    %70 = vector.load %arg6[%c0_23, %c0_24] : memref<8x256xbf16, #tpu.memory_space<vmem>>, vector<8x256xbf16>
    tpu.vector_store %arg6[%c0_23, %c0_24], %69 {strides = array<i32>} : memref<8x256xbf16, #tpu.memory_space<vmem>>, vector<8x256xbf16>,
    return
  }
  func.func @transform_0(%arg0: i32) -> (i32, i32, i32) {
    %c0_i32 = arith.constant 0 : i32
    %c0_i32_0 = arith.constant 0 : i32
    %c0_i32_1 = arith.constant 0 : i32
    return %c0_i32, %arg0, %c0_i32_0 : i32, i32, i32
  }
  func.func @transform_1(%arg0: i32) -> (i32, i32) {
    %c0_i32 = arith.constant 0 : i32
    %c0_i32_0 = arith.constant 0 : i32
    %c0_i32_1 = arith.constant 0 : i32
    return %c0_i32, %c0_i32_0 : i32, i32
  }
  func.func @transform_2(%arg0: i32) -> (i32, i32) {
    %c0_i32 = arith.constant 0 : i32
    %c0_i32_0 = arith.constant 0 : i32
    %c0_i32_1 = arith.constant 0 : i32
    return %c0_i32, %c0_i32_0 : i32, i32
  }
  func.func @transform_3(%arg0: i32) -> (i32, i32) {
    %c0_i32 = arith.constant 0 : i32
    %c0_i32_0 = arith.constant 0 : i32
    %c0_i32_1 = arith.constant 0 : i32
    return %c0_i32, %c0_i32_0 : i32, i32
  }
  func.func @transform_4(%arg0: i32) -> (i32, i32) {
    %c0_i32 = arith.constant 0 : i32
    %c0_i32_0 = arith.constant 0 : i32
    %c0_i32_1 = arith.constant 0 : i32
    return %c0_i32, %c0_i32_0 : i32, i32
  }
  func.func @transform_5(%arg0: i32) -> (i32, i32) {
    %c0_i32 = arith.constant 0 : i32
    %c0_i32_0 = arith.constant 0 : i32
    return %c0_i32, %arg0 : i32, i32
  }
}

module attributes {stable_mosaic.version = 11 : i64} {
  func.func @_pool_classifier_kernel(%arg0: i32, %arg1: memref<1x32x32xbf16, #tpu.memory_space<vmem>>, %arg2: memref<2x32xbf16, #tpu.memory_space<vmem>>, %arg3: memref<32x3xf32, #tpu.memory_space<vmem>>, %arg4: memref<1x3xf32, #tpu.memory_space<vmem>>, %arg5: memref<1x2x3xf32, #tpu.memory_space<vmem>>) attributes {dimension_semantics = [#tpu.dimension_semantics<parallel>], iteration_bounds = array<i64: 2>, scalar_prefetch = 0 : i64, scratch_operands = 0 : i64, tpu.core_type = #tpu.core_type<tc>, window_params = [{transform_indices = @transform_0, window_bounds = array<i64: 1, 32, 32>}, {pipeline_mode = #tpu.pipeline_mode<synchronous>, transform_indices = @transform_1, window_bounds = array<i64: 2, 32>}, {pipeline_mode = #tpu.pipeline_mode<synchronous>, transform_indices = @transform_2, window_bounds = array<i64: 32, 3>}, {pipeline_mode = #tpu.pipeline_mode<synchronous>, transform_indices = @transform_3, window_bounds = array<i64: 1, 3>}, {transform_indices = @transform_4, window_bounds = array<i64: 1, 2, 3>}]} {
    %c0 = arith.constant 0 : index
    %c0_0 = arith.constant 0 : index
    %0 = vector.load %arg2[%c0, %c0_0] : memref<2x32xbf16, #tpu.memory_space<vmem>>, vector<2x32xbf16>
    %c0_1 = arith.constant 0 : index
    %c0_2 = arith.constant 0 : index
    %c0_3 = arith.constant 0 : index
    %1 = vector.load %arg1[%c0_1, %c0_2, %c0_3] : memref<1x32x32xbf16, #tpu.memory_space<vmem>>, vector<1x32x32xbf16>
    %2 = vector.shape_cast %1 : vector<1x32x32xbf16> to vector<32x32xbf16>
    %cst = arith.constant dense<0.000000e+00> : vector<2x32xf32>
    %3 = tpu.matmul %0, %2, %cst {dimension_numbers = #tpu.dot_dimension_numbers<[1], [0], [0], [1], [0, 0, 1, 1], [], []>} : vector<2x32xbf16>, vector<32x32xbf16>, vector<2x32xf32> -> vector<2x32xf32>
    %c0_4 = arith.constant 0 : index
    %c0_5 = arith.constant 0 : index
    %4 = vector.load %arg3[%c0_4, %c0_5] : memref<32x3xf32, #tpu.memory_space<vmem>>, vector<32x3xf32>
    %cst_6 = arith.constant dense<0.000000e+00> : vector<2x3xf32>
    %5 = tpu.matmul %3, %4, %cst_6 {dimension_numbers = #tpu.dot_dimension_numbers<[1], [0], [0], [1], [0, 0, 1, 1], [], []>} : vector<2x32xf32>, vector<32x3xf32>, vector<2x3xf32> -> vector<2x3xf32>
    %c0_7 = arith.constant 0 : index
    %c0_8 = arith.constant 0 : index
    %6 = vector.load %arg4[%c0_7, %c0_8] : memref<1x3xf32, #tpu.memory_space<vmem>>, vector<1x3xf32>
    %7 = vector.broadcast %6 : vector<1x3xf32> to vector<2x3xf32>
    %8 = arith.addf %5, %7 : vector<2x3xf32>
    %cst_9 = arith.constant 0.000000e+00 : f32
    %9 = vector.broadcast %cst_9 : f32 to vector<2x3xf32>
    %10 = arith.subf %9, %8 : vector<2x3xf32>
    %11 = math.exp %10 : vector<2x3xf32>
    %cst_10 = arith.constant 1.000000e+00 : f32
    %12 = vector.broadcast %cst_10 : f32 to vector<2x3xf32>
    %13 = arith.addf %12, %11 : vector<2x3xf32>
    %cst_11 = arith.constant 1.000000e+00 : f32
    %14 = vector.broadcast %cst_11 : f32 to vector<2x3xf32>
    %15 = arith.divf %14, %13 : vector<2x3xf32>
    %c0_12 = arith.constant 0 : index
    %c0_13 = arith.constant 0 : index
    %c0_14 = arith.constant 0 : index
    %16 = vector.load %arg5[%c0_12, %c0_13, %c0_14] : memref<1x2x3xf32, #tpu.memory_space<vmem>>, vector<1x2x3xf32>
    %17 = vector.shape_cast %16 : vector<1x2x3xf32> to vector<2x3xf32>
    %18 = vector.shape_cast %15 : vector<2x3xf32> to vector<1x2x3xf32>
    tpu.vector_store %arg5[%c0_12, %c0_13, %c0_14], %18 {strides = array<i32>} : memref<1x2x3xf32, #tpu.memory_space<vmem>>, vector<1x2x3xf32>,
    return
  }
  func.func @transform_0(%arg0: i32) -> (i32, i32, i32) {
    %c0_i32 = arith.constant 0 : i32
    %c0_i32_0 = arith.constant 0 : i32
    %c0_i32_1 = arith.constant 0 : i32
    return %arg0, %c0_i32, %c0_i32_0 : i32, i32, i32
  }
  func.func @transform_1(%arg0: i32) -> (i32, i32) {
    %c0_i32 = arith.constant 0 : i32
    %c0_i32_0 = arith.constant 0 : i32
    %c0_i32_1 = arith.constant 0 : i32
    return %c0_i32, %c0_i32_0 : i32, i32
  }
  func.func @transform_2(%arg0: i32) -> (i32, i32) {
    %c0_i32 = arith.constant 0 : i32
    %c0_i32_0 = arith.constant 0 : i32
    %c0_i32_1 = arith.constant 0 : i32
    return %c0_i32, %c0_i32_0 : i32, i32
  }
  func.func @transform_3(%arg0: i32) -> (i32, i32) {
    %c0_i32 = arith.constant 0 : i32
    %c0_i32_0 = arith.constant 0 : i32
    %c0_i32_1 = arith.constant 0 : i32
    return %c0_i32, %c0_i32_0 : i32, i32
  }
  func.func @transform_4(%arg0: i32) -> (i32, i32, i32) {
    %c0_i32 = arith.constant 0 : i32
    %c0_i32_0 = arith.constant 0 : i32
    %c0_i32_1 = arith.constant 0 : i32
    return %arg0, %c0_i32, %c0_i32_0 : i32, i32, i32
  }
}

</mosaic_0001>

<bundles_post_ra>
// kernel: _lambda_.5
= control target key start
LH: loop header
LB: loop body
LE: loop exit
PB: predicated region body
PF: predicated region fallthrough
CT: control target
= control target key end

     0   :  { %9 = vsyncpa [#allocation3], 0  ;;  %s732_s0 = inlined_call_operand.vmem [shape: bf16[2,32,32], index: 0, kind: input, shape index: {}]   ;;  %s733_s1 = inlined_call_operand.vmem [shape: bf16[2,32], index: 1, kind: input, shape index: {}]   ;;  %s734_s2 = inlined_call_operand.vmem [shape: f32[32,3], index: 2, kind: input, shape index: {}]   ;;  %s735_s3 = inlined_call_operand.vmem [shape: f32[1,3], index: 3, kind: input, shape index: {}]   ;;  %s736_s4 = inlined_call_operand.hbm [shape: f32[2,2,3], index: 4, kind: output, shape index: {}]  }
   0x1   :  { %11 = vsyncpa [#allocation3 + $0x1], 0  ;;  %s614_s15 = smov 0   ;;  %s616_s16 = smov 0  }
   0x2   :  { %s618_s17 = smov 0   ;;  %s620_s18 = smov 0  }
   0x3 LB: > { %s635_s19 = sadd.s32 4294967295, %s583_s18   ;;  %s423_s20 = sadd.s32 4294967294, %s583_s18   ;;  %s583_s18 = sphi %s620_s18, %s742_s18   ;;  %s579_s17 = sphi %s618_s17, %s741_s17   ;;  %s575_s16 = sphi %s616_s16, %s740_s16   ;;  %s571_s15 = sphi %s614_s15, %s739_s15  }
   0x4   : > { %s639_s21 = sadd.s32 1, %s583_s18   ;;  %s113_s22 = sadd.s32 1, %s579_s17 }
   0x5   : > { %s110_s23 = ssub.s32 %s583_s18, %s639_s21  ;;  %p123_p0 = scmp.ne.s32.totalorder %s579_s17, %s575_s16 }
   0x6   : > { %p111_p1 = scmp.eq.s32.totalorder %s110_s23, 0  ;;  %p124_p2 = scmp.eq.s32.totalorder %s635_s19, 1 }
   0x7   : > { %p129_p3 = scmp.ne.s32.totalorder %s575_s16, %s571_s15  ;;  %p130_p4 = scmp.eq.s32.totalorder %s423_s20, 1 }
   0x8   : > { %s650_s24 = scalar_select %p111_p1, %s579_s17, %s113_s22  }
   0x9   : > { %p652_p5 = por %p124_p2, %p123_p0  ;;  %p656_p6 = por %p130_p4, %p129_p3 }
   0xa   : > { %p426_p7 = scmp.ge.s32.totalorder %s583_s18, 1  ;;  %p165_p8 = scmp.lt.s32.totalorder %s583_s18, 3 }
   0xc   : > { %p166_p9 = pnand %p426_p7, %p165_p8 }
   0xd   : > { %p191_p10 = scmp.lt.s32.totalorder (!%p166_p9), %s635_s19, 1  ;;  %v585_v0 = vmov (!%p166_p9), 0.0   ;;  %vm586_vm0 = vmmov (!%p166_p9), 0   ;;  %v258_v1 = vld [vmem:[%s734_s2] sm:$0xff] (!%p166_p9)  ;;  %v259_v2 = vld [vmem:[%s734_s2 + $0x8] sm:$0xff] (!%p166_p9)  ;;  %v260_v3 = vld [vmem:[%s734_s2 + $0x10] sm:$0xff] (!%p166_p9) }
   0xe   : > { %169 = sbr.rel (%p166_p9) target bundleno = 501 (0x1f5), region = 36  ;;  %448 = vmatprep.subr.bf16.mxu0 (!%p166_p9), %v585_v0  ;;  %452 = vmatprep.mubr.msk.bf16.mxu0 (!%p166_p9), %vm586_vm0, %v585_v0  ;;  %v587_v4 = vmov (!%p166_p9), 0.0|0.0   ;;  %v468_v5 = vpack.c.bf16 (!%p166_p9), %v259_v2, %v258_v1  ;;  %v261_v6 = vld [vmem:[%s734_s2 + $0x18] sm:$0xff] (!%p166_p9)  ;;  %v197_v10 = vld [vmem:[%s733_s1] sm:$0x1] (!%p166_p9)  ;;  %vm214_vm1 = vcmask (!%p166_p9), 261120  }
   0xf   : > { %467 = vmatprep.subr.bf16.mxu1 (!%p166_p9), %v587_v4  ;;  %464 = vmatprep.mubr.msk.f32.mxu1 (!%p166_p9), %vm586_vm0, %v585_v0  ;;  %v471_v7 = vpack.c.bf16 (!%p166_p9), %v261_v6, %v260_v3  ;;  %v433_v15 = vld [vmem:[%s735_s3] ss:$0 sm:$0xff] (!%p166_p9)  ;;  %s188_s27 = sand.u32 (!%p166_p9), 1, %s575_s16   ;;  %s436_s29 = sshll.u32 (!%p166_p9), %s635_s19, 5  ;;  %vm348_vm2 = vcmask (!%p166_p9), 17408  }
  0x10   : > { %469 = vmatpush3.bf16.msra.mxu1 (!%p166_p9), %v468_v5  ;;  %s427_s28 = sshll.u32 (!%p166_p9), %s188_s27, 1  ;;  %s690_s8 = scalar_lea.hbm (!%p166_p9), %s736_s4, %s436_s29 }
  0x11   : > { %470 = vmatprep.subr.bf16.mxu1 (!%p166_p9), %v587_v4  ;;  %s190_s30 = scalar_lea.vmem (!%p166_p9), [#allocation2], %s427_s28  ;;  %s351_s9 = scalar_lea.sflag (!%p166_p9), [#allocation3], %s188_s27 }
  0x12   : > { %s364_s5 = sshll.u32 (!%p166_p9), %s190_s30, 4  ;;  %s692_s5 = int_to_ptr.vmem [resolvable:$true] %s364_s5 }
  0x14   : > { %472 = vmatpush3.bf16.msra.mxu1 (!%p166_p9), %v471_v7 }
  0x15   : > { %s192_s7 = scalar_select %p191_p10, %s635_s19, 1 }
  0x16   : > { %s588_s19 = smov [#allocation2]  }
  0x17   : > { %s439_s10 = sshll.u32 %s192_s7, 4  ;;  %s525_s11 = sshll.u32 %s588_s19, 4  ;;  %s526_s11 = int_to_ptr.vmem [resolvable:$false] %s525_s11 }
  0x18   : > { %s195_s13 = scalar_lea.vmem %s732_s0, %s439_s10  ;;  %s521_s10 = scalar_lea.vmem %s692_s5, 32 }
  0x19   : > { %v515_v8 = vld [vmem:[%s195_s13] sm:$0xff]   ;;  %v516_v9 = vld [vmem:[%s195_s13 + $0x8] sm:$0xff]   ;;  %p522_p11 = scmp.ne.s32.totalorder %s692_s5, %s521_s10  ;;  %s527_s12 = scalar_lea.vmem %s526_s11, 64 }
  0x1a   : > { %449 = vmatpush3.bf16.msra.mxu0 %v515_v8  ;;  %p528_p0 = scmp.lt.s32.totalorder %s692_s5, %s526_s11  ;;  %p529_p1 = scmp.lt.s32.totalorder %s527_s12, %s521_s10 }
  0x1b   : > { %450 = vmatprep.subr.bf16.mxu0 %v585_v0  ;;  %p523_p12 = pnand %p522_p11, %p652_p5 }
  0x1c   : > { %p530_p2 = por %p529_p1, %p528_p0 }
  0x1d   : > { %p524_p13 = pneg %p523_p12 }
  0x1e   : > { %451 = vmatpush3.bf16.msra.mxu0 %v516_v9 }
  0x1f   : > { %p531_p3 = pnand %p530_p2, %p524_p13 }
  0x21   : > { %453 = vmatmul.mubr.msk.bf16.vlgmr.msra.gmra.mrb[0].mxu0 %vm214_vm1, %v197_v10 }
  0xf4   : > { %v252_v11 = vpop.f32.mrb[0].mxu0 }
  0xf5   : > { %v454_v12 = vpop.f32.mrb[1].mxu0  ;;  %465 = vmatmul.mubr.msk.f32.vlgmr.msra.gmra.mrb[0].mxu1 %vm214_vm1, %v252_v11 }
  0xf6   : > { %v255_v13 = vpop.f32.mrb[2].mxu0 }
  0xf7   : > { %v455_v14 = vpop.f32.mrb[3].mxu0 }
 0x1c8   : > { %v338_v16 = vpop.f32.mrb[0].mxu1 }
 0x1c9   : > { %v339_v17 = vadd.f32 %v433_v15, %v338_v16  ;;  %v466_v18 = vpop.f32.mrb[1].mxu1 }
 0x1cb   : > { %v342_v19 = vsub.f32 0.0, %v339_v17 }
 0x1cd   : > { %v343_v20 = vmul.f32 1.442695, %v342_v19 }
 0x1cf   : > { %517 = vpow2.f32 %v343_v20 }
 0x1d9   : > { %v518_v21 = vpop.eup %517 }
 0x1da   : > { %v345_v22 = vadd.f32 1.0, %v518_v21 }
 0x1dc   : > { %519 = vrcp.f32 %v345_v22 }
 0x1e6   : > { %v520_v23 = vpop.eup %519 }
 0x1e7   : > { %349 = vst.msk [vmem:[%s190_s30] sm:$0x3] %vm348_vm2, %v520_v23 }
 0x1e8   : > { %534 = shalt.err (!%p531_p3)
}
 0x1e9   : > { %s535_s13 = scalar_lea.hbm %s690_s8, 32  ;;  %s539_s22 = scalar_lea.hbm %s736_s4, 64 }
 0x1ea   : > { %p536_p4 = scmp.ne.s32.totalorder %s690_s8, %s535_s13  ;;  %p540_p9 = scmp.lt.u32.totalorder %s690_s8, %s736_s4 }
 0x1eb   : > { %p541_p10 = scmp.lt.u32.totalorder %s539_s22, %s535_s13  ;;  %p543_p12 = scmp.lt.u32.totalorder %s535_s13, %s690_s8 }
 0x1ec   : > { %p537_p7 = pnand %p536_p4, %p652_p5 }
 0x1ed   : > { %p542_p11 = por %p541_p10, %p540_p9 }
 0x1ee   : > { %p538_p8 = pneg %p537_p7 }
 0x1ef   : > { %p544_p13 = por %p543_p12, %p542_p11 }
 0x1f1   : > { %p545_p0 = pnand %p544_p13, %p538_p8 }
 0x1f3   : > { %548 = shalt.err (!%p545_p0)
}
 0x1f4   : > { %473 = dma.vmem_to_hbm [thread:$0]  (%p652_p5), %s692_s5, 32, %s690_s8, %s351_s9  }
 0x1f5 PF: > { %p479_p1 = scmp.ge.s32.totalorder %s583_s18, 2  ;;  %s376_s28 = sand.u32 1, %s571_s15  }
 0x1f6   : > { %s377_s29 = scalar_lea.sflag [#allocation3], %s376_s28 }
 0x1f7   : > { %p476_p2 = pnand %p479_p1, %p656_p6 }
 0x1f9   : > { %566 = dma.done.wait (!%p476_p2), %s377_s29, 32  }
 0x1fa   : > { %568 = vsyncadd (!%p476_p2), %s377_s29, 4294967264  ;;  %p14_p3 = scmp.ge.s32.totalorder %s639_s21, 4   ;;  %s739_s15 = smov %s575_s16 }
 0x1fb   : > { %s740_s16 = smov %s579_s17  ;;  %s741_s17 = smov %s650_s24 }
 0x1fc   : > { %s742_s18 = smov %s639_s21  ;;  %16 = sbr.rel (!%p14_p3) target bundleno = 3 (0x3), region = 71 }
 0x203   :  { %382 = vsyncpa [#allocation3], 1 }
 0x204   :  { %384 = vsyncpa [#allocation3 + $0x1], 1 }

// kernel: _lambda_.4
= control target key start
LH: loop header
LB: loop body
LE: loop exit
PB: predicated region body
PF: predicated region fallthrough
CT: control target
= control target key end

     0   :  { %v33_v0 = vlaneseq  ;;  %v1972_v2 = vmov 1983009808   ;;  %v1973_v4 = vmov 1934713408   ;;  %v1974_v31 = vmov 0   ;;  %s1978_s30 = smov 64   ;;  %s2404_s1 = inlined_call_operand.vmem [shape: bf16[32,128], index: 1, kind: input, shape index: {}]   ;;  %s2405_s0 = inlined_call_operand.vmem [shape: bf16[8,8,32], index: 0, kind: input, shape index: {}]   ;;  %s2406_s2 = inlined_call_operand.vmem [shape: f32[1,128], index: 2, kind: input, shape index: {}]   ;;  %s2407_s3 = inlined_call_operand.vmem [shape: f32[1,32], index: 3, kind: input, shape index: {}]   ;;  %s2408_s4 = inlined_call_operand.vmem [shape: f32[1,32], index: 4, kind: input, shape index: {}]   ;;  %s2409_s5 = inlined_call_operand.vmem [shape: bf16[8,256], index: 5, kind: output, shape index: {}]  }
   0x1   :  { %v1902_v1 = vld [vmem:[%s2404_s1] sm:$0xff]   ;;  %v31_v3 = vunpack.c.l.s4 %v1972_v2  ;;  %v48_v5 = vunpack.c.l.s4 %v1973_v4  ;;  %v1903_v6 = vld [vmem:[%s2404_s1 + $0x8] sm:$0xff]   ;;  %vm156_vm0 = vcmask 261120   ;;  %v1975_v53 = vmov 0.0   ;;  %s1979_s6 = smov 32  }
   0x2   :  { %v34_v7 = vshrl.u32 %v33_v0, 7  ;;  %1786 = vmatprep.subr.bf16.mxu0 %v1902_v1  ;;  %v1904_v10 = vld [vmem:[%s2405_s0] ss:$16 sps:$4 sm:$0xff]   ;;  %v1905_v12 = vld [vmem:[%s2405_s0 + $0x8] ss:$16 sps:$4 sm:$0xff]   ;;  %1798 = vmatprep.subr.bf16.mxu1 %v1975_v53  ;;  %vm1976_vm1 = vmmov 0  }
   0x3   :  { %v32_v8 = vunpack.c.0.s8 %v31_v3  ;;  %1787 = vmatpush3.bf16.msra.mxu0 %v1902_v1  ;;  %v49_v9 = vunpack.c.0.s8 %v48_v5  ;;  %v1906_v13 = vld [vmem:[%s2405_s0 + $0x4] ss:$16 sps:$4 sm:$0xff]   ;;  %v1907_v14 = vld [vmem:[%s2405_s0 + $0xc] ss:$16 sps:$4 sm:$0xff]   ;;  %1800 = vmatprep.mubr.msk.bf16.mxu1 %vm1976_vm1, %v1975_v53  ;;  %v1706_v54 = vld [vmem:[%s2406_s2] ss:$0 sm:$0xff] }
   0x4   :  { %1788 = vmatprep.subr.bf16.mxu0 %v1903_v6  ;;  %s1977_s2 = smov 96   ;;  %vm642_vm2 = vcmask 64512   ;;  %vm764_vm3 = vcmask 1043456   ;;  %vm1682_vm12 = vcmask 523264   ;;  %vm1685_vm13 = vcmask 785408  }
   0x5   :  { %v2019_v11 = vsub.s32 %v32_v8, %v34_v7  ;;  %v2032_v17 = vsub.s32 %v49_v9, %v34_v7 }
   0x7   :  { %v36_v15 = vrot.slane %v1904_v10, %v2019_v11  ;;  %1789 = vmatpush3.bf16.msra.mxu0 %v1903_v6  ;;  %v44_v16 = vrot.slane %v1905_v12, %v2019_v11  ;;  %v70_v18 = vrot.slane %v1906_v13, %v2019_v11  ;;  %v78_v19 = vrot.slane %v1907_v14, %v2019_v11 }
   0x8   :  { %1810 = vmatprep.subr.bf16.mxu0 %v1975_v53 }
   0x9   :  { %v45_v20 = vcombine.low %v36_v15, %v44_v16  ;;  %v46_v21 = vcombine.high %v36_v15, %v44_v16  ;;  %v79_v22 = vcombine.low %v70_v18, %v78_v19  ;;  %v80_v23 = vcombine.high %v70_v18, %v78_v19 }
   0xb   :  { %v53_v24 = vrot.slane %v45_v20, %v2032_v17  ;;  %v87_v25 = vrot.slane %v79_v22, %v2032_v17  ;;  %v60_v26 = vrot.slane %v46_v21, %v2032_v17  ;;  %v94_v27 = vrot.slane %v80_v23, %v2032_v17 }
   0xd   :  { %v99_v28 = vpack.i.b16 %v87_v25, %v53_v24  ;;  %v100_v29 = vshrl.u32 %v53_v24, 16  ;;  %v101_v30 = vshrl.u32 %v87_v25, 16  ;;  %v61_v32 = vcombine.high %v53_v24, %v1974_v31 }
   0xe   :  { %v95_v33 = vcombine.high %v87_v25, %v1974_v31  ;;  %v111_v34 = vpack.i.b16 %v94_v27, %v60_v26  ;;  %v112_v35 = vshrl.u32 %v60_v26, 16  ;;  %v113_v36 = vshrl.u32 %v94_v27, 16 }
   0xf   :  { %v102_v37 = vpack.i.b16 %v101_v30, %v100_v29  ;;  %v106_v38 = vshrl.u32 %v61_v32, 16  ;;  %v62_v39 = vcombine.high %v60_v26, %v1974_v31  ;;  %v96_v40 = vcombine.high %v94_v27, %v1974_v31 }
  0x10   :  { %v105_v41 = vpack.i.b16 %v95_v33, %v61_v32  ;;  %v107_v42 = vshrl.u32 %v95_v33, 16  ;;  %v114_v43 = vpack.i.b16 %v113_v36, %v112_v35 }
  0x11   :  { %v1707_v44 = vcombine.low %v99_v28, %v102_v37  ;;  %v118_v46 = vshrl.u32 %v62_v39, 16  ;;  %v119_v47 = vshrl.u32 %v96_v40, 16  ;;  %v117_v50 = vpack.i.b16 %v96_v40, %v62_v39 }
  0x12   :  { %v108_v45 = vpack.i.b16 %v107_v42, %v106_v38  ;;  %v1709_v48 = vcombine.low %v111_v34, %v114_v43 }
  0x13   :  { %1790 = vmatprep.mubr.msk.bf16.mxu0 %vm156_vm0, %v1707_v44  ;;  %v120_v51 = vpack.i.b16 %v119_v47, %v118_v46 }
  0x14   :  { %v1708_v49 = vcombine.low %v105_v41, %v108_v45 }
  0x15   :  { %v1710_v52 = vcombine.low %v117_v50, %v120_v51 }
  0x16   :  { %1791 = vmatmul.mubr.msk.bf16.vlgmr.msra.gmra.mrb[0].mxu0 %vm156_vm0, %v1708_v49 }
  0x17   :  { %1794 = vmatprep.mubr.msk.bf16.mxu0 %vm156_vm0, %v1709_v48 }
  0x1e   :  { %1795 = vmatmul.mubr.msk.bf16.gmra.mrb[4].mxu0 %vm156_vm0, %v1710_v52 }
  0x1f   :  { %1812 = vmatprep.mubr.msk.bf16.mxu0 %vm1976_vm1, %v1975_v53 }
  0xe9   :  { %v1792_v55 = vpop.f32.mrb[0].mxu0 }
  0xea   :  { %v2057_v56 = vadd.f32 %v1792_v55, %v1706_v54  ;;  %v203_v57 = vpop.f32.mrb[1].mxu0 }
  0xeb   :  { %v2059_v58 = vadd.f32 %v1706_v54, %v203_v57  ;;  %v1793_v59 = vpop.f32.mrb[2].mxu0 }
  0xec   :  { %v2063_v60 = vpack.c.bf16 %v2057_v56, %v2057_v56  ;;  %v2065_v61 = vadd.f32 %v1793_v59, %v1706_v54  ;;  %v206_v62 = vpop.f32.mrb[3].mxu0 }
  0xed   :  { %v2069_v63 = vpack.c.bf16 %v2059_v58, %v2059_v58  ;;  %v2071_v0 = vadd.f32 %v1706_v54, %v206_v62 }
  0xee   :  { %341 = vrot.lane.b32.xlu1 %v2063_v60, %s1977_s2  ;;  %v347_v1 = vsel %vm156_vm0, %v2063_v60, 0  ;;  %v2083_v3 = vpack.c.bf16 %v2065_v61, %v2065_v61 }
  0xef   :  { %1811 = vmatpush3.bf16.xpose.msra.mxu0 %v347_v1  ;;  %243 = vrot.lane.b32.xlu0 %v2069_v63, %s1977_s2  ;;  %v249_v2 = vsel %vm156_vm0, %v2069_v63, 0  ;;  %v2088_v4 = vpack.c.bf16 %v2071_v0, %v2071_v0 }
  0xf0   :  { %1799 = vmatpush3.bf16.xpose.msra.mxu1 %v249_v2  ;;  %1822 = vmatprep.subr.bf16.mxu0 %v1975_v53  ;;  %v396_v25 = vsel %vm156_vm0, %v2083_v3, 0 }
  0xf1   :  { %v1796_v5 = vpop.f32.mrb[4].mxu0  ;;  %1804 = vmatprep.subr.bf16.mxu1 %v1975_v53  ;;  %v298_v22 = vsel %vm156_vm0, %v2088_v4, 0 }
  0xf2   :  { %390 = vrot.lane.b32.xlu1 %v2083_v3, %s1977_s2  ;;  %v219_v6 = vpop.f32.mrb[5].mxu0  ;;  %v2093_v7 = vadd.f32 %v1796_v5, %v1706_v54 }
  0xf3   :  { %v2095_v8 = vadd.f32 %v1706_v54, %v219_v6  ;;  %292 = vrot.lane.b32.xlu0 %v2088_v4, %s1977_s2  ;;  %v1797_v9 = vpop.f32.mrb[6].mxu0 }
  0xf4   :  { %v222_v10 = vpop.f32.mrb[7].mxu0  ;;  %v2103_v13 = vadd.f32 %v1797_v9, %v1706_v54  ;;  %v2109_v15 = vpack.c.bf16 %v2093_v7, %v2093_v7 }
  0xf5   :  { %v2101_v12 = vpack.c.bf16 %v2095_v8, %v2095_v8  ;;  %v2105_v14 = vadd.f32 %v1706_v54, %v222_v10 }
  0xf6   :  { %v2119_v18 = vpack.c.bf16 %v2103_v13, %v2103_v13  ;;  %v543_v26 = vsel %vm156_vm0, %v2109_v15, 0 }
  0xf7   :  { %439 = vrot.lane.b32.xlu0 %v2101_v12, %s1977_s2  ;;  %v2115_v16 = vpack.c.bf16 %v2105_v14, %v2105_v14  ;;  %v445_v20 = vsel %vm156_vm0, %v2101_v12, 0 }
  0xf8   :  { %v592_v32 = vsel %vm156_vm0, %v2119_v18, 0 }
  0xf9   :  { %488 = vrot.lane.b32.xlu1 %v2115_v16, %s1977_s2  ;;  %v494_v29 = vsel %vm156_vm0, %v2115_v16, 0 }
  0xfb   :  { %537 = vrot.lane.b32.xlu0 %v2109_v15, %s1977_s2 }
  0xfd   :  { %586 = vrot.lane.b32.xlu1 %v2119_v18, %s1977_s2 }
 0x160   :  { %v342_v19 = vpop.permute.xlu1 %341 }
 0x161   :  { %1813 = vmatmul.mubr.msk.bf16.vlgmr.msra.gmra.mrb[8].mxu0 %vm156_vm0, %v342_v19  ;;  %v244_v21 = vpop.permute.xlu0 %243 }
 0x162   :  { %1823 = vmatpush3.bf16.xpose.msra.mxu0 %v445_v20  ;;  %1801 = vmatmul.mubr.msk.bf16.vlgmr.msra.gmra.mrb[0].mxu1 %vm156_vm0, %v244_v21 }
 0x163   :  { %1805 = vmatpush3.bf16.xpose.msra.mxu1 %v298_v22  ;;  %1824 = vmatprep.mubr.msk.bf16.mxu0 %vm1976_vm1, %v1975_v53 }
 0x164   :  { %1834 = vmatprep.subr.bf16.mxu0 %v1975_v53  ;;  %1806 = vmatprep.mubr.msk.bf16.mxu1 %vm1976_vm1, %v1975_v53  ;;  %v391_v28 = vpop.permute.xlu1 %390 }
 0x165   :  { %v293_v23 = vpop.permute.xlu0 %292  ;;  %1816 = vmatprep.subr.bf16.mxu1 %v1975_v53 }
 0x169   :  { %v440_v24 = vpop.permute.xlu0 %439 }
 0x16a   :  { %1807 = vmatmul.mubr.msk.bf16.vlgmr.msra.gmra.mrb[4].mxu1 %vm156_vm0, %v293_v23  ;;  %1825 = vmatmul.mubr.msk.bf16.vlgmr.msra.gmra.mrb[12].mxu0 %vm156_vm0, %v440_v24 }
 0x16b   :  { %1817 = vmatpush3.bf16.xpose.msra.mxu1 %v396_v25  ;;  %1835 = vmatpush3.bf16.xpose.msra.mxu0 %v543_v26  ;;  %v489_v30 = vpop.permute.xlu1 %488 }
 0x16c   :  { %1836 = vmatprep.mubr.msk.bf16.mxu0 %vm1976_vm1, %v1975_v53  ;;  %1818 = vmatprep.mubr.msk.bf16.mxu1 %vm1976_vm1, %v1975_v53 }
 0x16d   :  { %1828 = vmatprep.subr.bf16.mxu1 %v1975_v53  ;;  %1846 = vmatprep.subr.bf16.mxu0 %v1975_v53  ;;  %v538_v27 = vpop.permute.xlu0 %537 }
 0x16f   :  { %v587_v33 = vpop.permute.xlu1 %586 }
 0x172   :  { %1819 = vmatmul.mubr.msk.bf16.vlgmr.msra.gmra.mrb[8].mxu1 %vm156_vm0, %v391_v28  ;;  %1837 = vmatmul.mubr.msk.bf16.vlgmr.msra.gmra.mrb[16].mxu0 %vm156_vm0, %v538_v27 }
 0x173   :  { %1829 = vmatpush3.bf16.xpose.msra.mxu1 %v494_v29  ;;  %1830 = vmatprep.mubr.msk.bf16.mxu1 %vm1976_vm1, %v1975_v53 }
 0x174   :  { %1840 = vmatprep.subr.bf16.mxu1 %v1975_v53  ;;  %1848 = vmatprep.mubr.msk.bf16.mxu0 %vm1976_vm1, %v1975_v53 }
 0x17a   :  { %1831 = vmatmul.mubr.msk.bf16.vlgmr.msra.gmra.mrb[12].mxu1 %vm156_vm0, %v489_v30 }
 0x17b   :  { %1841 = vmatpush3.bf16.xpose.msra.mxu1 %v592_v32  ;;  %1842 = vmatprep.mubr.msk.bf16.mxu1 %vm1976_vm1, %v1975_v53 }
 0x17c   :  { %1852 = vmatprep.subr.bf16.mxu1 %v1975_v53 }
 0x182   :  { %1843 = vmatmul.mubr.msk.bf16.vlgmr.msra.gmra.mrb[16].mxu1 %vm156_vm0, %v587_v33 }
 0x183   :  { %1854 = vmatprep.mubr.msk.bf16.mxu1 %vm1976_vm1, %v1975_v53 }
 0x234   :  { %v383_v34 = vpop.f32.mrb[8].mxu0 }
 0x235   :  { %v285_v35 = vpop.f32.mrb[0].mxu1  ;;  %v1814_v36 = vpop.f32.mrb[9].mxu0  ;;  %v636_v42 = vmul.f32 0.17677669, %v383_v34 }
 0x236   :  { %v2169_v37 = vmul.f32 0.17677669, %v285_v35  ;;  %v1802_v38 = vpop.f32.mrb[1].mxu1  ;;  %v386_v39 = vpop.f32.mrb[10].mxu0 }
 0x237   :  { %v288_v40 = vpop.f32.mrb[2].mxu1  ;;  %v1815_v41 = vpop.f32.mrb[11].mxu0  ;;  %v649_v45 = vsel %vm642_vm2, %v636_v42, -inf }
 0x238   :  { %v1803_v43 = vpop.f32.mrb[3].mxu1  ;;  %v643_v44 = vsel %vm642_vm2, %v2169_v37, -inf }
 0x239   :  { %644 = vmax.xlane.f32.xlu0 %v643_v44 }
 0x23d   :  { %650 = vmax.xlane.f32.xlu0 %v649_v45  ;;  %v334_v46 = vpop.f32.mrb[4].mxu1  ;;  %v481_v47 = vpop.f32.mrb[12].mxu0 }
 0x23e   :  { %v635_v48 = vmul.f32 0.17677669, %v334_v46  ;;  %v1808_v49 = vpop.f32.mrb[5].mxu1  ;;  %v2174_v50 = vmul.f32 0.17677669, %v481_v47  ;;  %v1826_v51 = vpop.f32.mrb[13].mxu0 }
 0x23f   :  { %v337_v52 = vpop.f32.mrb[6].mxu1  ;;  %v484_v54 = vpop.f32.mrb[14].mxu0 }
 0x240   :  { %v1809_v55 = vpop.f32.mrb[7].mxu1  ;;  %v646_v57 = vsel %vm642_vm2, %v635_v48, -inf  ;;  %v1827_v59 = vpop.f32.mrb[15].mxu0  ;;  %v655_v62 = vsel %vm642_vm2, %v2174_v50, -inf }
 0x241   :  { %647 = vmax.xlane.f32.xlu1 %v646_v57 }
 0x245   :  { %v579_v1 = vpop.f32.mrb[16].mxu0  ;;  %656 = vmax.xlane.f32.xlu1 %v655_v62  ;;  %v432_v2 = vpop.f32.mrb[8].mxu1 }
 0x246   :  { %v2179_v5 = vmul.f32 0.17677669, %v579_v1  ;;  %v637_v6 = vmul.f32 0.17677669, %v432_v2  ;;  %v1820_v9 = vpop.f32.mrb[9].mxu1  ;;  %v1838_v10 = vpop.f32.mrb[17].mxu0 }
 0x247   :  { %v435_v19 = vpop.f32.mrb[10].mxu1  ;;  %v582_v20 = vpop.f32.mrb[18].mxu0 }
 0x248   :  { %v1821_v21 = vpop.f32.mrb[11].mxu1  ;;  %v661_v22 = vsel %vm642_vm2, %v2179_v5, -inf  ;;  %v652_v23 = vsel %vm642_vm2, %v637_v6, -inf  ;;  %v1839_v24 = vpop.f32.mrb[19].mxu0 }
 0x249   :  { %662 = vmax.xlane.f32.xlu1 %v661_v22  ;;  %653 = vmax.xlane.f32.xlu0 %v652_v23 }
 0x24d   :  { %v530_v25 = vpop.f32.mrb[12].mxu1 }
 0x24e   :  { %v639_v26 = vmul.f32 0.17677669, %v530_v25  ;;  %v1832_v27 = vpop.f32.mrb[13].mxu1 }
 0x24f   :  { %v533_v28 = vpop.f32.mrb[14].mxu1 }
 0x250   :  { %v658_v29 = vsel %vm642_vm2, %v639_v26, -inf  ;;  %v1833_v30 = vpop.f32.mrb[15].mxu1 }
 0x251   :  { %659 = vmax.xlane.f32.xlu0 %v658_v29 }
 0x255   :  { %v628_v32 = vpop.f32.mrb[16].mxu1 }
 0x256   :  { %v641_v33 = vmul.f32 0.17677669, %v628_v32  ;;  %v1844_v34 = vpop.f32.mrb[17].mxu1 }
 0x257   :  { %v631_v35 = vpop.f32.mrb[18].mxu1 }
 0x258   :  { %v664_v36 = vsel %vm642_vm2, %v641_v33, -inf  ;;  %v1845_v38 = vpop.f32.mrb[19].mxu1 }
 0x259   :  { %665 = vmax.xlane.f32.xlu0 %v664_v36 }
 0x25a   :  { %755 = vrot.lane.b32.xlu1 %v2069_v63, %s1978_s30 }
 0x25e   :  { %892 = vrot.lane.b32.xlu1 %v2063_v60, %s1978_s30 }
 0x262   :  { %960 = vrot.lane.b32.xlu1 %v2083_v3, %s1978_s30 }
 0x26f   :  { %824 = vrot.lane.b32.xlu0 %v2088_v4, %s1978_s30 }
 0x273   :  { %1028 = vrot.lane.b32.xlu0 %v2101_v12, %s1978_s30 }
 0x2c6   :  { %v645_v39 = vpop.xlane.xlu0 %644 }
 0x2c7   :  { %v667_v40 = vsub.f32 %v2169_v37, %v645_v39 }
 0x2c9   :  { %v675_v44 = vmul.f32 1.442695, %v667_v40 }
 0x2ca   :  { %v651_v41 = vpop.xlane.xlu0 %650 }
 0x2cb   :  { %v669_v43 = vsub.f32 %v636_v42, %v651_v41 }
 0x2cd   :  { %v679_v45 = vmul.f32 1.442695, %v669_v43 }
 0x2ce   :  { %v648_v63 = vpop.xlane.xlu1 %647 }
 0x2cf   :  { %1908 = vpow2.f32 %v679_v45  ;;  %v668_v46 = vsub.f32 %v635_v48, %v648_v63 }
 0x2d0   :  { %1910 = vpow2.f32 %v675_v44 }
 0x2d1   :  { %v677_v60 = vmul.f32 1.442695, %v668_v46 }
 0x2d2   :  { %v657_v47 = vpop.xlane.xlu1 %656 }
 0x2d3   :  { %1912 = vpow2.f32 %v677_v60 }
 0x2d6   :  { %v663_v3 = vpop.xlane.xlu1 %662  ;;  %v654_v49 = vpop.xlane.xlu0 %653 }
 0x2d7   :  { %v670_v4 = vsub.f32 %v637_v6, %v654_v49  ;;  %v673_v28 = vsub.f32 %v2179_v5, %v663_v3 }
 0x2d9   :  { %v2197_v51 = vpop.eup %1908  ;;  %v681_v12 = vmul.f32 1.442695, %v670_v4  ;;  %v687_v29 = vmul.f32 1.442695, %v673_v28 }
 0x2da   :  { %v756_v52 = vpop.permute.xlu1 %755  ;;  %v697_v37 = vsel %vm642_vm2, %v2197_v51, 0.0  ;;  %v1911_v42 = vpop.eup %1910 }
 0x2db   :  { %v766_v54 = vsel %vm764_vm3, %v756_v52, 0  ;;  %698 = vadd.xlane.f32.xlu1 %v697_v37  ;;  %1914 = vpow2.f32 %v681_v12  ;;  %v691_v57 = vsel %vm642_vm2, %v1911_v42, 0.0 }
 0x2dc   :  { %1847 = vmatpush3.bf16.msra.mxu0 %v766_v54 }
 0x2dd   :  { %v1913_v48 = vpop.eup %1912  ;;  %1858 = vmatprep.subr.bf16.mxu0 %v1975_v53 }
 0x2de   :  { %v660_v55 = vpop.xlane.xlu0 %659  ;;  %v694_v59 = vsel %vm642_vm2, %v1913_v48, 0.0  ;;  %v2222_v34 = vpop.permute.xlu1 %892 }
 0x2df   :  { %v672_v62 = vsub.f32 %v639_v26, %v660_v55  ;;  %692 = vadd.xlane.f32.xlu1 %v691_v57  ;;  %695 = vadd.xlane.f32.xlu0 %v694_v59  ;;  %v671_v26 = vsub.f32 %v2174_v50, %v657_v47 }
 0x2e1   :  { %v685_v1 = vmul.f32 1.442695, %v672_v62  ;;  %v683_v27 = vmul.f32 1.442695, %v671_v26 }
 0x2e2   :  { %v2224_v35 = vpop.permute.xlu1 %960 }
 0x2e3   :  { %1916 = vpow2.f32 %v685_v1 }
 0x2e5   :  { %v1915_v2 = vpop.eup %1914 }
 0x2e6   :  { %v666_v6 = vpop.xlane.xlu0 %665  ;;  %v700_v10 = vsel %vm642_vm2, %v1915_v2, 0.0 }
 0x2e7   :  { %v674_v9 = vsub.f32 %v641_v33, %v666_v6  ;;  %701 = vadd.xlane.f32.xlu0 %v700_v10 }
 0x2e9   :  { %v689_v19 = vmul.f32 1.442695, %v674_v9 }
 0x2ea   :  { %v825_v20 = vpop.permute.xlu0 %824 }
 0x2eb   :  { %1918 = vpow2.f32 %v689_v19  ;;  %v834_v21 = vsel %vm764_vm3, %v825_v20, 0 }
 0x2ec   :  { %1853 = vmatpush3.bf16.msra.mxu1 %v834_v21  ;;  %1920 = vpow2.f32 %v683_v27 }
 0x2ed   :  { %v2207_v22 = vpop.eup %1916  ;;  %1864 = vmatprep.subr.bf16.mxu1 %v1975_v53  ;;  %1922 = vpow2.f32 %v687_v29 }
 0x2ee   :  { %v706_v23 = vsel %vm642_vm2, %v2207_v22, 0.0  ;;  %v2226_v36 = vpop.permute.xlu0 %1028 }
 0x2ef   :  { %707 = vadd.xlane.f32.xlu0 %v706_v23 }
 0x2f0   :  { %1096 = vrot.lane.b32.xlu1 %v2115_v16, %s1978_s30 }
 0x2f5   :  { %v2214_v24 = vpop.eup %1918 }
 0x2f6   :  { %v712_v25 = vsel %vm642_vm2, %v2214_v24, 0.0  ;;  %v1921_v30 = vpop.eup %1920 }
 0x2f7   :  { %713 = vadd.xlane.f32.xlu0 %v712_v25  ;;  %v703_v32 = vsel %vm642_vm2, %v1921_v30, 0.0  ;;  %v1923_v33 = vpop.eup %1922 }
 0x2f8   :  { %v709_v16 = vsel %vm642_vm2, %v1923_v33, 0.0 }
 0x314   :  { %704 = vadd.xlane.f32.xlu1 %v703_v32 }
 0x318   :  { %710 = vadd.xlane.f32.xlu1 %v709_v16 }
 0x368   :  { %v699_v50 = vpop.xlane.xlu1 %698 }
 0x36c   :  { %v693_v38 = vpop.xlane.xlu1 %692  ;;  %v696_v5 = vpop.xlane.xlu0 %695 }
 0x36d   :  { %1924 = vrcp.f32 %v693_v38 }
 0x36e   :  { %1926 = vrcp.f32 %v696_v5 }
 0x36f   :  { %1928 = vrcp.f32 %v699_v50 }
 0x370   :  { %v1097_v47 = vpop.permute.xlu1 %1096 }
 0x371   :  { %v1106_v19 = vsel %vm764_vm3, %v1097_v47, 0 }
 0x374   :  { %v702_v63 = vpop.xlane.xlu0 %701 }
 0x375   :  { %1930 = vrcp.f32 %v702_v63 }
 0x377   :  { %v1925_v39 = vpop.eup %1924 }
 0x378   :  { %v1927_v40 = vpop.eup %1926  ;;  %v716_v41 = vmul.f32 %v1925_v39, %v1911_v42 }
 0x379   :  { %v718_v43 = vmul.f32 %v1927_v40, %v1913_v48  ;;  %v1929_v46 = vpop.eup %1928 }
 0x37a   :  { %v731_v44 = vpack.c.bf16 %v716_v41, %v716_v41  ;;  %v720_v3 = vmul.f32 %v1929_v46, %v2197_v51 }
 0x37b   :  { %v732_v45 = vpack.c.bf16 %v718_v43, %v718_v43 }
 0x37c   :  { %739 = vxpose.xlu0.c.b16.start.end [1/1] (short) (narrow) %v731_v44, 16  ;;  %v708_v49 = vpop.xlane.xlu0 %707  ;;  %v733_v52 = vpack.c.bf16 %v720_v3, %v720_v3 }
 0x37d   :  { %808 = vxpose.xlu1.c.b16.start.end [1/1] (short) (narrow) %v732_v45, 16  ;;  %1932 = vrcp.f32 %v708_v49 }
 0x37f   :  { %v1931_v60 = vpop.eup %1930 }
 0x380   :  { %v722_v4 = vmul.f32 %v1931_v60, %v1915_v2 }
 0x381   :  { %1232 = vrot.lane.b32.xlu1 %v2119_v18, %s1978_s30 }
 0x382   :  { %v734_v42 = vpack.c.bf16 %v722_v4, %v722_v4 }
 0x384   :  { %v714_v37 = vpop.xlane.xlu0 %713 }
 0x385   :  { %1164 = vrot.lane.b32.xlu0 %v2109_v15, %s1978_s30 }
 0x387   :  { %v1933_v18 = vpop.eup %1932 }
 0x388   :  { %v726_v51 = vmul.f32 %v1933_v18, %v2207_v22 }
 0x38a   :  { %v736_v2 = vpack.c.bf16 %v726_v51, %v726_v51 }
 0x3a1   :  { %v705_v12 = vpop.xlane.xlu1 %704 }
 0x3a2   :  { %1934 = vrcp.f32 %v705_v12 }
 0x3a3   :  { %876 = vxpose.xlu0.c.b16.start.end [1/1] (short) (narrow) %v733_v52, 16  ;;  %1936 = vrcp.f32 %v714_v37 }
 0x3a4   :  { %944 = vxpose.xlu1.c.b16.start.end [1/1] (short) (narrow) %v734_v42, 16 }
 0x3a5   :  { %v711_v15 = vpop.xlane.xlu1 %710 }
 0x3a6   :  { %1938 = vrcp.f32 %v711_v15 }
 0x3ac   :  { %v1935_v54 = vpop.eup %1934 }
 0x3ad   :  { %v724_v48 = vmul.f32 %v1935_v54, %v1921_v30  ;;  %v1937_v55 = vpop.eup %1936 }
 0x3ae   :  { %v730_v6 = vmul.f32 %v1937_v55, %v2214_v24 }
 0x3af   :  { %v735_v57 = vpack.c.bf16 %v724_v48, %v724_v48 }
 0x3b0   :  { %v1939_v59 = vpop.eup %1938  ;;  %v738_v9 = vpack.c.bf16 %v730_v6, %v730_v6 }
 0x3b1   :  { %1012 = vxpose.xlu0.c.b16.start.end [1/1] (short) (narrow) %v735_v57, 16  ;;  %v728_v62 = vmul.f32 %v1939_v59, %v1923_v33 }
 0x3b3   :  { %v737_v1 = vpack.c.bf16 %v728_v62, %v728_v62 }
 0x3b5   :  { %1148 = vxpose.xlu1.c.b16.start.end [1/1] (short) (narrow) %v737_v1, 16  ;;  %1080 = vxpose.xlu0.c.b16.start.end [1/1] (short) (narrow) %v736_v2, 16 }
 0x3b9   :  { %758 = vrot.lane.b32.xlu1 %v2059_v58, %s1979_s6  ;;  %1216 = vxpose.xlu0.c.b16.start.end [1/1] (short) (narrow) %v738_v9, 16 }
 0x3bd   :  { %895 = vrot.lane.b32.xlu1 %v2057_v56, %s1979_s6  ;;  %v902_v56 = vsel %vm764_vm3, %v2222_v34, 0 }
 0x3c1   :  { %963 = vrot.lane.b32.xlu1 %v2065_v61, %s1979_s6 }
 0x3c2   :  { %827 = vrot.lane.b32.xlu0 %v2071_v0, %s1979_s6  ;;  %v970_v0 = vsel %vm764_vm3, %v2224_v35, 0 }
 0x3c5   :  { %1099 = vrot.lane.b32.xlu1 %v2105_v14, %s1979_s6  ;;  %v1038_v14 = vsel %vm764_vm3, %v2226_v36, 0 }
 0x3c6   :  { %1031 = vrot.lane.b32.xlu0 %v2095_v8, %s1979_s6 }
 0x3c9   :  { %1235 = vrot.lane.b32.xlu1 %v2103_v13, %s1979_s6 }
 0x3ca   :  { %1167 = vrot.lane.b32.xlu0 %v2093_v7, %s1979_s6 }
 0x3e2   :  { %v747_v58 = vpop.trf.xlu0 }
 0x3e3   :  { %v816_v61 = vpop.trf.xlu1  ;;  %1849 = vmatmul.mubr.msk.bf16.vlgmr.msra.gmra.mrb[20].mxu0 %vm642_vm2, %v747_v58 }
 0x3e4   :  { %1855 = vmatmul.mubr.msk.bf16.vlgmr.msra.gmra.mrb[20].mxu1 %vm642_vm2, %v816_v61  ;;  %1859 = vmatpush3.bf16.msra.mxu0 %v902_v56 }
 0x3e5   :  { %1865 = vmatpush3.bf16.msra.mxu1 %v970_v0  ;;  %1866 = vmatprep.mubr.msk.bf16.mxu1 %vm1976_vm1, %v1975_v53 }
 0x3e6   :  { %1876 = vmatprep.subr.bf16.mxu1 %v1975_v53  ;;  %1860 = vmatprep.mubr.msk.bf16.mxu0 %vm1976_vm1, %v1975_v53 }
 0x3e7   :  { %1870 = vmatprep.subr.bf16.mxu0 %v1975_v53 }
 0x3f3   :  { %v1233_v8 = vpop.permute.xlu1 %1232 }
 0x3f4   :  { %v1242_v23 = vsel %vm764_vm3, %v1233_v8, 0 }
 0x3f7   :  { %v1165_v7 = vpop.permute.xlu0 %1164 }
 0x3f8   :  { %v1174_v21 = vsel %vm764_vm3, %v1165_v7, 0 }
 0x409   :  { %v884_v13 = vpop.trf.xlu0 }
 0x40a   :  { %v952_v10 = vpop.trf.xlu1  ;;  %1861 = vmatmul.mubr.msk.bf16.vlgmr.msra.gmra.mrb[24].mxu0 %vm642_vm2, %v884_v13 }
 0x40b   :  { %1867 = vmatmul.mubr.msk.bf16.vlgmr.msra.gmra.mrb[24].mxu1 %vm642_vm2, %v952_v10  ;;  %1871 = vmatpush3.bf16.msra.mxu0 %v1038_v14 }
 0x40c   :  { %1877 = vmatpush3.bf16.msra.mxu1 %v1106_v19  ;;  %1872 = vmatprep.mubr.msk.bf16.mxu0 %vm1976_vm1, %v1975_v53 }
 0x40d   :  { %1882 = vmatprep.subr.bf16.mxu0 %v1975_v53  ;;  %1878 = vmatprep.mubr.msk.bf16.mxu1 %vm1976_vm1, %v1975_v53 }
 0x40e   :  { %1888 = vmatprep.subr.bf16.mxu1 %v1975_v53 }
 0x417   :  { %v1020_v20 = vpop.trf.xlu0 }
 0x418   :  { %1873 = vmatmul.mubr.msk.bf16.vlgmr.msra.gmra.mrb[28].mxu0 %vm642_vm2, %v1020_v20 }
 0x419   :  { %1883 = vmatpush3.bf16.msra.mxu0 %v1174_v21  ;;  %1884 = vmatprep.mubr.msk.bf16.mxu0 %vm1976_vm1, %v1975_v53 }
 0x41b   :  { %v1088_v22 = vpop.trf.xlu0  ;;  %v1156_v24 = vpop.trf.xlu1 }
 0x41c   :  { %1879 = vmatmul.mubr.msk.bf16.vlgmr.msra.gmra.mrb[28].mxu1 %vm642_vm2, %v1088_v22 }
 0x41d   :  { %1889 = vmatpush3.bf16.msra.mxu1 %v1242_v23  ;;  %1890 = vmatprep.mubr.msk.bf16.mxu1 %vm1976_vm1, %v1975_v53 }
 0x41f   :  { %v1224_v25 = vpop.trf.xlu0 }
 0x420   :  { %1885 = vmatmul.mubr.msk.bf16.vlgmr.msra.gmra.mrb[32].mxu0 %vm642_vm2, %v1156_v24 }
 0x424   :  { %1891 = vmatmul.mubr.msk.bf16.vlgmr.msra.gmra.mrb[32].mxu1 %vm642_vm2, %v1224_v25 }
 0x42b   :  { %v759_v26 = vpop.permute.xlu1 %758 }
 0x42f   :  { %v896_v5 = vpop.permute.xlu1 %895 }
 0x433   :  { %v964_v39 = vpop.permute.xlu1 %963 }
 0x434   :  { %v828_v27 = vpop.permute.xlu0 %827 }
 0x437   :  { %v1100_v48 = vpop.permute.xlu1 %1099 }
 0x438   :  { %v1032_v12 = vpop.permute.xlu0 %1031 }
 0x43b   :  { %v1236_v7 = vpop.permute.xlu1 %1235 }
 0x43c   :  { %v1168_v2 = vpop.permute.xlu0 %1167 }
 0x4b6   :  { %v802_v28 = vpop.f32.mrb[20].mxu0 }
 0x4b7   :  { %v2284_v29 = vadd.f32 %v802_v28, %v759_v26  ;;  %v870_v30 = vpop.f32.mrb[20].mxu1  ;;  %v1850_v32 = vpop.f32.mrb[21].mxu0 }
 0x4b8   :  { %v2286_v33 = vadd.f32 %v870_v30, %v828_v27  ;;  %v1856_v16 = vpop.f32.mrb[21].mxu1  ;;  %v805_v34 = vpop.f32.mrb[22].mxu0 }
 0x4b9   :  { %v1284_v35 = vsel %vm156_vm0, %v2284_v29, 0.0  ;;  %v873_v53 = vpop.f32.mrb[22].mxu1  ;;  %v1851_v36 = vpop.f32.mrb[23].mxu0 }
 0x4ba   :  { %1285 = vadd.xlane.f32.xlu0 %v1284_v35  ;;  %v1287_v50 = vsel %vm156_vm0, %v2286_v33, 0.0  ;;  %v1857_v38 = vpop.f32.mrb[23].mxu1 }
 0x4bb   :  { %1288 = vadd.xlane.f32.xlu1 %v1287_v50 }
 0x4dd   :  { %v938_v40 = vpop.f32.mrb[24].mxu0 }
 0x4de   :  { %v939_v41 = vadd.f32 %v938_v40, %v896_v5  ;;  %v1006_v43 = vpop.f32.mrb[24].mxu1  ;;  %v1862_v44 = vpop.f32.mrb[25].mxu0 }
 0x4df   :  { %v1868_v45 = vpop.f32.mrb[25].mxu1  ;;  %v941_v63 = vpop.f32.mrb[26].mxu0  ;;  %v1007_v46 = vadd.f32 %v1006_v43, %v964_v39 }
 0x4e0   :  { %v1290_v60 = vsel %vm156_vm0, %v939_v41, 0.0  ;;  %v1009_v47 = vpop.f32.mrb[26].mxu1  ;;  %v1863_v3 = vpop.f32.mrb[27].mxu0 }
 0x4e1   :  { %1291 = vadd.xlane.f32.xlu0 %v1290_v60  ;;  %v1869_v49 = vpop.f32.mrb[27].mxu1  ;;  %v1293_v4 = vsel %vm156_vm0, %v1007_v46, 0.0 }
 0x4e5   :  { %1294 = vadd.xlane.f32.xlu0 %v1293_v4 }
 0x4eb   :  { %v1074_v52 = vpop.f32.mrb[28].mxu0 }
 0x4ec   :  { %v1075_v37 = vadd.f32 %v1074_v52, %v1032_v12  ;;  %v1874_v42 = vpop.f32.mrb[29].mxu0 }
 0x4ed   :  { %v1077_v15 = vpop.f32.mrb[30].mxu0 }
 0x4ee   :  { %v1875_v18 = vpop.f32.mrb[31].mxu0  ;;  %v1296_v54 = vsel %vm156_vm0, %v1075_v37, 0.0 }
 0x4ef   :  { %1297 = vadd.xlane.f32.xlu1 %v1296_v54  ;;  %v1142_v55 = vpop.f32.mrb[28].mxu1 }
 0x4f0   :  { %v1143_v57 = vadd.f32 %v1142_v55, %v1100_v48  ;;  %v1880_v51 = vpop.f32.mrb[29].mxu1 }
 0x4f1   :  { %v1145_v59 = vpop.f32.mrb[30].mxu1 }
 0x4f2   :  { %v1881_v62 = vpop.f32.mrb[31].mxu1  ;;  %v1299_v1 = vsel %vm156_vm0, %v1143_v57, 0.0 }
 0x4f3   :  { %v1210_v6 = vpop.f32.mrb[32].mxu0  ;;  %1300 = vadd.xlane.f32.xlu0 %v1299_v1 }
 0x4f4   :  { %v1211_v9 = vadd.f32 %v1210_v6, %v1168_v2  ;;  %v1886_v58 = vpop.f32.mrb[33].mxu0 }
 0x4f5   :  { %v1213_v56 = vpop.f32.mrb[34].mxu0 }
 0x4f6   :  { %v1887_v61 = vpop.f32.mrb[35].mxu0  ;;  %v1302_v0 = vsel %vm156_vm0, %v1211_v9, 0.0 }
 0x4f7   :  { %1303 = vadd.xlane.f32.xlu1 %v1302_v0  ;;  %v1278_v8 = vpop.f32.mrb[32].mxu1 }
 0x4f8   :  { %v1279_v13 = vadd.f32 %v1278_v8, %v1236_v7  ;;  %v1892_v14 = vpop.f32.mrb[33].mxu1 }
 0x4f9   :  { %v1281_v10 = vpop.f32.mrb[34].mxu1 }
 0x4fa   :  { %v1893_v19 = vpop.f32.mrb[35].mxu1  ;;  %v1305_v20 = vsel %vm156_vm0, %v1279_v13, 0.0 }
 0x4fb   :  { %1306 = vadd.xlane.f32.xlu0 %v1305_v20 }
 0x547   :  { %v1286_v21 = vpop.xlane.xlu0 %1285 }
 0x548   :  { %v1309_v22 = vmul.f32 0.03125, %v1286_v21  ;;  %v1289_v23 = vpop.xlane.xlu1 %1288 }
 0x549   :  { %v1310_v24 = vmul.f32 0.03125, %v1289_v23  ;;  %v1733_v23 = vld [vmem:[%s2407_s3] ss:$0 sm:$0xff] }
 0x54a   :  { %v2299_v25 = vsub.f32 %v2284_v29, %v1309_v22 }
 0x54b   :  { %v2302_v26 = vsub.f32 %v2286_v33, %v1310_v24 }
 0x54c   :  { %v1325_v27 = vmul.f32 %v2299_v25, %v2299_v25 }
 0x54d   :  { %v1326_v28 = vmul.f32 %v2302_v26, %v2302_v26 }
 0x54e   :  { %v1333_v30 = vsel %vm156_vm0, %v1325_v27, 0.0 }
 0x54f   :  { %1334 = vadd.xlane.f32.xlu1 %v1333_v30  ;;  %v1336_v32 = vsel %vm156_vm0, %v1326_v28, 0.0 }
 0x550   :  { %1337 = vadd.xlane.f32.xlu0 %v1336_v32 }
 0x56e   :  { %v1292_v16 = vpop.xlane.xlu0 %1291 }
 0x56f   :  { %v1311_v34 = vmul.f32 0.03125, %v1292_v16 }
 0x571   :  { %v2310_v35 = vsub.f32 %v939_v41, %v1311_v34 }
 0x572   :  { %v1295_v29 = vpop.xlane.xlu0 %1294 }
 0x573   :  { %v1312_v53 = vmul.f32 0.03125, %v1295_v29  ;;  %v1327_v33 = vmul.f32 %v2310_v35, %v2310_v35  ;;  %v1734_v29 = vld [vmem:[%s2408_s4] ss:$0 sm:$0xff] }
 0x575   :  { %v2314_v36 = vsub.f32 %v1007_v46, %v1312_v53  ;;  %v1339_v50 = vsel %vm156_vm0, %v1327_v33, 0.0 }
 0x576   :  { %1340 = vadd.xlane.f32.xlu1 %v1339_v50 }
 0x577   :  { %v1328_v38 = vmul.f32 %v2314_v36, %v2314_v36 }
 0x579   :  { %v1342_v5 = vsel %vm156_vm0, %v1328_v38, 0.0 }
 0x57a   :  { %1343 = vadd.xlane.f32.xlu0 %v1342_v5 }
 0x57c   :  { %v1298_v39 = vpop.xlane.xlu1 %1297 }
 0x57d   :  { %v1313_v40 = vmul.f32 0.03125, %v1298_v39 }
 0x57f   :  { %v2320_v41 = vsub.f32 %v1075_v37, %v1313_v40 }
 0x580   :  { %v1301_v43 = vpop.xlane.xlu0 %1300 }
 0x581   :  { %v1314_v44 = vmul.f32 0.03125, %v1301_v43  ;;  %v1329_v45 = vmul.f32 %v2320_v41, %v2320_v41 }
 0x583   :  { %v2324_v63 = vsub.f32 %v1143_v57, %v1314_v44  ;;  %v1345_v46 = vsel %vm156_vm0, %v1329_v45, 0.0 }
 0x584   :  { %1346 = vadd.xlane.f32.xlu1 %v1345_v46  ;;  %v1304_v60 = vpop.xlane.xlu1 %1303 }
 0x585   :  { %v1315_v47 = vmul.f32 0.03125, %v1304_v60  ;;  %v1330_v3 = vmul.f32 %v2324_v63, %v2324_v63 }
 0x587   :  { %v2329_v49 = vsub.f32 %v1211_v9, %v1315_v47  ;;  %v1348_v4 = vsel %vm156_vm0, %v1330_v3, 0.0 }
 0x588   :  { %1349 = vadd.xlane.f32.xlu0 %v1348_v4  ;;  %v1307_v12 = vpop.xlane.xlu0 %1306 }
 0x589   :  { %v1316_v52 = vmul.f32 0.03125, %v1307_v12  ;;  %v1331_v37 = vmul.f32 %v2329_v49, %v2329_v49 }
 0x58b   :  { %v2334_v42 = vsub.f32 %v1279_v13, %v1316_v52  ;;  %v1351_v15 = vsel %vm156_vm0, %v1331_v37, 0.0 }
 0x58c   :  { %1352 = vadd.xlane.f32.xlu1 %v1351_v15 }
 0x58d   :  { %v1332_v18 = vmul.f32 %v2334_v42, %v2334_v42 }
 0x58f   :  { %v1354_v54 = vsel %vm156_vm0, %v1332_v18, 0.0 }
 0x590   :  { %1355 = vadd.xlane.f32.xlu0 %v1354_v54 }
 0x5dc   :  { %v1335_v48 = vpop.xlane.xlu1 %1334 }
 0x5dd   :  { %v1338_v55 = vpop.xlane.xlu0 %1337  ;;  %v1357_v51 = vmul.f32 0.03125, %v1335_v48 }
 0x5de   :  { %v1358_v62 = vmul.f32 0.03125, %v1338_v55 }
 0x5df   :  { %v1365_v2 = vadd.f32 1e-05, %v1357_v51 }
 0x5e0   :  { %v1366_v58 = vadd.f32 1e-05, %v1358_v62 }
 0x5e1   :  { %1940 = vrsqrt.f32 %v1365_v2 }
 0x5eb   :  { %v1941_v13 = vpop.eup %1940 }
 0x5ec   :  { %v1381_v21 = vmul.f32 %v1941_v13, %v2299_v25 }
 0x5ee   :  { %v1396_v16 = vmul.f32 %v1733_v23, %v1381_v21 }
 0x5f0   :  { %v1411_v5 = vadd.f32 %v1734_v29, %v1396_v16 }
 0x5f2   :  { %v1427_v46 = vmin.f32 %v1411_v5, 0.0  ;;  %vm1419_vm5 = vcmp.gt.f32.partialorder %v1411_v5, 0.0 }
 0x5f4   :  { %v1435_v37 = vmul.f32 1.442695, %v1427_v46 }
 0x603   :  { %v1341_v57 = vpop.xlane.xlu1 %1340 }
 0x604   :  { %v1359_v59 = vmul.f32 0.03125, %v1341_v57 }
 0x606   :  { %v1367_v6 = vadd.f32 1e-05, %v1359_v59 }
 0x607   :  { %v1344_v1 = vpop.xlane.xlu0 %1343 }
 0x608   :  { %v1360_v9 = vmul.f32 0.03125, %v1344_v1  ;;  %1942 = vrsqrt.f32 %v1367_v6 }
 0x609   :  { %1944 = vrsqrt.f32 %v1366_v58 }
 0x60a   :  { %v1368_v56 = vadd.f32 1e-05, %v1360_v9 }
 0x60c   :  { %1946 = vrsqrt.f32 %v1368_v56 }
 0x611   :  { %v1347_v61 = vpop.xlane.xlu1 %1346 }
 0x612   :  { %v1361_v0 = vmul.f32 0.03125, %v1347_v61  ;;  %v1943_v10 = vpop.eup %1942 }
 0x613   :  { %v1945_v20 = vpop.eup %1944  ;;  %v1383_v24 = vmul.f32 %v1943_v10, %v2310_v35 }
 0x614   :  { %v1369_v7 = vadd.f32 1e-05, %v1361_v0  ;;  %v1382_v30 = vmul.f32 %v1945_v20, %v2302_v26 }
 0x615   :  { %v1350_v8 = vpop.xlane.xlu0 %1349  ;;  %v1398_v25 = vmul.f32 %v1733_v23, %v1383_v24 }
 0x616   :  { %1948 = vrsqrt.f32 %v1369_v7  ;;  %v1362_v14 = vmul.f32 0.03125, %v1350_v8  ;;  %v1947_v28 = vpop.eup %1946  ;;  %v1397_v38 = vmul.f32 %v1733_v23, %v1382_v30 }
 0x617   :  { %v1384_v53 = vmul.f32 %v1947_v28, %v2314_v36  ;;  %v2351_v40 = vadd.f32 %v1734_v29, %v1398_v25 }
 0x618   :  { %v1370_v19 = vadd.f32 1e-05, %v1362_v14  ;;  %v2353_v45 = vadd.f32 %v1734_v29, %v1397_v38 }
 0x619   :  { %v1353_v22 = vpop.xlane.xlu1 %1352  ;;  %v1399_v26 = vmul.f32 %v1733_v23, %v1384_v53  ;;  %v1429_v47 = vmin.f32 %v2351_v40, 0.0  ;;  %vm1421_vm6 = vcmp.gt.f32.partialorder %v2351_v40, 0.0 }
 0x61a   :  { %1950 = vrsqrt.f32 %v1370_v19  ;;  %v1363_v27 = vmul.f32 0.03125, %v1353_v22  ;;  %vm1420_vm9 = vcmp.gt.f32.partialorder %v2353_v45, 0.0 }
 0x61b   :  { %v2357_v3 = vadd.f32 %v1734_v29, %v1399_v26  ;;  %v1439_v48 = vmul.f32 1.442695, %v1429_v47 }
 0x61c   :  { %v1371_v32 = vadd.f32 1e-05, %v1363_v27 }
 0x61d   :  { %v1356_v34 = vpop.xlane.xlu0 %1355  ;;  %v1430_v55 = vmin.f32 %v2357_v3, 0.0  ;;  %vm1422_vm10 = vcmp.gt.f32.partialorder %v2357_v3, 0.0 }
 0x61e   :  { %1952 = vrsqrt.f32 %v1371_v32  ;;  %v1364_v33 = vmul.f32 0.03125, %v1356_v34 }
 0x61f   :  { %v1441_v6 = vmul.f32 1.442695, %v1430_v55 }
 0x620   :  { %v1949_v50 = vpop.eup %1948  ;;  %v1372_v35 = vadd.f32 1e-05, %v1364_v33 }
 0x621   :  { %v1385_v39 = vmul.f32 %v1949_v50, %v2320_v41  ;;  %v1428_v41 = vmin.f32 %v2353_v45, 0.0 }
 0x622   :  { %1954 = vrsqrt.f32 %v1372_v35 }
 0x623   :  { %v1400_v43 = vmul.f32 %v1733_v23, %v1385_v39  ;;  %v1437_v59 = vmul.f32 1.442695, %v1428_v41 }
 0x624   :  { %v1951_v44 = vpop.eup %1950 }
 0x625   :  { %v1415_v60 = vadd.f32 %v1734_v29, %v1400_v43  ;;  %v1386_v36 = vmul.f32 %v1951_v44, %v2324_v63 }
 0x627   :  { %v1431_v4 = vmin.f32 %v1415_v60, 0.0  ;;  %v1401_v12 = vmul.f32 %v1733_v23, %v1386_v36  ;;  %vm1423_vm4 = vcmp.gt.f32.partialorder %v1415_v60, 0.0 }
 0x628   :  { %v1953_v52 = vpop.eup %1952 }
 0x629   :  { %v1443_v15 = vmul.f32 1.442695, %v1431_v4  ;;  %v1416_v18 = vadd.f32 %v1734_v29, %v1401_v12  ;;  %v1387_v54 = vmul.f32 %v1953_v52, %v2329_v49 }
 0x62b   :  { %1956 = vpow2.f32 %v1443_v15  ;;  %v1432_v57 = vmin.f32 %v1416_v18, 0.0  ;;  %v1402_v63 = vmul.f32 %v1733_v23, %v1387_v54  ;;  %vm1424_vm7 = vcmp.gt.f32.partialorder %v1416_v18, 0.0 }
 0x62c   :  { %v1955_v51 = vpop.eup %1954  ;;  %1958 = vpow2.f32 %v1435_v37 }
 0x62d   :  { %v1445_v62 = vmul.f32 1.442695, %v1432_v57  ;;  %v1417_v1 = vadd.f32 %v1734_v29, %v1402_v63  ;;  %v1388_v2 = vmul.f32 %v1955_v51, %v2334_v42  ;;  %1960 = vpow2.f32 %v1439_v48 }
 0x62f   :  { %1962 = vpow2.f32 %v1445_v62  ;;  %v1433_v9 = vmin.f32 %v1417_v1, 0.0  ;;  %v1403_v58 = vmul.f32 %v1733_v23, %v1388_v2  ;;  %vm1425_vm8 = vcmp.gt.f32.partialorder %v1417_v1, 0.0 }
 0x630   :  { %1964 = vpow2.f32 %v1437_v59 }
 0x631   :  { %v1447_v49 = vmul.f32 1.442695, %v1433_v9  ;;  %v1418_v56 = vadd.f32 %v1734_v29, %v1403_v58  ;;  %1966 = vpow2.f32 %v1441_v6 }
 0x633   :  { %1968 = vpow2.f32 %v1447_v49  ;;  %v1434_v61 = vmin.f32 %v1418_v56, 0.0  ;;  %vm1426_vm11 = vcmp.gt.f32.partialorder %v1418_v56, 0.0 }
 0x635   :  { %v1957_v0 = vpop.eup %1956  ;;  %v1449_v7 = vmul.f32 1.442695, %v1434_v61 }
 0x636   :  { %v1959_v8 = vpop.eup %1958  ;;  %v1739_v14 = vadd.f32 -1.0, %v1957_v0 }
 0x637   :  { %1970 = vpow2.f32 %v1449_v7  ;;  %v1961_v13 = vpop.eup %1960  ;;  %v1735_v19 = vadd.f32 -1.0, %v1959_v8 }
 0x638   :  { %v1737_v21 = vadd.f32 -1.0, %v1961_v13  ;;  %v1463_v22 = vsel %vm1423_vm4, %v1415_v60, %v1739_v14 }
 0x639   :  { %v1963_v10 = vpop.eup %1962  ;;  %v1459_v27 = vsel %vm1419_vm5, %v1411_v5, %v1735_v19 }
 0x63a   :  { %v1965_v42 = vpop.eup %1964  ;;  %v1740_v23 = vadd.f32 -1.0, %v1963_v10  ;;  %v1743_v32 = vpack.c.bf16 %v1463_v22, %v1459_v27  ;;  %v1461_v16 = vsel %vm1421_vm6, %v2351_v40, %v1737_v21 }
 0x63b   :  { %v1967_v20 = vpop.eup %1966  ;;  %v1736_v28 = vadd.f32 -1.0, %v1965_v42 }
 0x63c   :  { %v1738_v34 = vadd.f32 -1.0, %v1967_v20  ;;  %v1464_v29 = vsel %vm1424_vm7, %v1416_v18, %v1740_v23  ;;  %v1482_v35 = vrot.slane %v1743_v32, %v2019_v11 }
 0x63d   :  { %v1969_v24 = vpop.eup %1968  ;;  %v1460_v50 = vsel %vm1420_vm9, %v2353_v45, %v1736_v28 }
 0x63e   :  { %v1741_v30 = vadd.f32 -1.0, %v1969_v24  ;;  %v1745_v5 = vpack.c.bf16 %v1464_v29, %v1460_v50  ;;  %v1462_v40 = vsel %vm1422_vm10, %v2357_v3, %v1738_v34 }
 0x640   :  { %v1465_v25 = vsel %vm1425_vm8, %v1417_v1, %v1741_v30  ;;  %v1516_v60 = vrot.slane %v1745_v5, %v2019_v11 }
 0x641   :  { %v1971_v53 = vpop.eup %1970  ;;  %v1744_v33 = vpack.c.bf16 %v1465_v25, %v1461_v16 }
 0x642   :  { %v1742_v38 = vadd.f32 -1.0, %v1971_v53 }
 0x643   :  { %v1490_v39 = vrot.slane %v1744_v33, %v2019_v11 }
 0x644   :  { %v1466_v26 = vsel %vm1426_vm11, %v1418_v56, %v1742_v38 }
 0x645   :  { %v1746_v43 = vpack.c.bf16 %v1466_v26, %v1462_v40  ;;  %v1491_v44 = vcombine.low %v1482_v35, %v1490_v39  ;;  %v1492_v46 = vcombine.high %v1482_v35, %v1490_v39 }
 0x647   :  { %v1524_v36 = vrot.slane %v1746_v43, %v2019_v11  ;;  %v1499_v45 = vrot.slane %v1491_v44, %v2032_v17  ;;  %v1506_v47 = vrot.slane %v1492_v46, %v2032_v17 }
 0x649   :  { %v1525_v4 = vcombine.low %v1516_v60, %v1524_v36  ;;  %v1526_v12 = vcombine.high %v1516_v60, %v1524_v36  ;;  %v1507_v52 = vcombine.high %v1499_v45, %v1974_v31  ;;  %v1508_v37 = vcombine.high %v1506_v47, %v1974_v31 }
 0x64a   :  { %v1547_v15 = vshrl.u32 %v1499_v45, 16  ;;  %v1563_v51 = vshrl.u32 %v1506_v47, 16 }
 0x64b   :  { %v1533_v41 = vrot.slane %v1525_v4, %v2032_v17  ;;  %v1540_v3 = vrot.slane %v1526_v12, %v2032_v17  ;;  %v1555_v57 = vshrl.u32 %v1507_v52, 16  ;;  %v1571_v58 = vshrl.u32 %v1508_v37, 16 }
 0x64d   :  { %v1541_v18 = vcombine.high %v1533_v41, %v1974_v31  ;;  %v1542_v54 = vcombine.high %v1540_v3, %v1974_v31  ;;  %v1545_v48 = vpack.i.b16 %v1533_v41, %v1499_v45  ;;  %v1548_v55 = vshrl.u32 %v1533_v41, 16 }
 0x64e   :  { %v1561_v63 = vpack.i.b16 %v1540_v3, %v1506_v47  ;;  %v1564_v59 = vshrl.u32 %v1540_v3, 16 }
 0x64f   :  { %v1549_v62 = vpack.i.b16 %v1548_v55, %v1547_v15  ;;  %v1553_v1 = vpack.i.b16 %v1541_v18, %v1507_v52  ;;  %v1556_v2 = vshrl.u32 %v1541_v18, 16  ;;  %v1569_v6 = vpack.i.b16 %v1542_v54, %v1508_v37 }
 0x650   :  { %v1565_v9 = vpack.i.b16 %v1564_v59, %v1563_v51  ;;  %v1572_v49 = vshrl.u32 %v1542_v54, 16  ;;  %v1575_v56 = vcombine.low %v1545_v48, %v1561_v63 }
 0x651   :  { %v1557_v61 = vpack.i.b16 %v1556_v2, %v1555_v57  ;;  %v1583_v0 = vcombine.low %v1553_v1, %v1569_v6 }
 0x652   :  { %v1573_v7 = vpack.i.b16 %v1572_v49, %v1571_v58  ;;  %v1609_v8 = vcombine.low %v1549_v62, %v1565_v9  ;;  %v1582_v13 = vrot.slane %v1575_v56, %v2019_v11 }
 0x653   :  { %v1590_v14 = vrot.slane %v1583_v0, %v2019_v11 }
 0x654   :  { %v1617_v10 = vcombine.low %v1557_v61, %v1573_v7  ;;  %v1616_v42 = vrot.slane %v1609_v8, %v2019_v11 }
 0x655   :  { %v1591_v19 = vcombine.low %v1582_v13, %v1590_v14  ;;  %v1592_v21 = vcombine.high %v1582_v13, %v1590_v14 }
 0x656   :  { %v1624_v20 = vrot.slane %v1617_v10, %v2019_v11 }
 0x657   :  { %v1599_v22 = vrot.slane %v1591_v19, %v2032_v17  ;;  %v1606_v30 = vrot.slane %v1592_v21, %v2032_v17 }
 0x658   :  { %v1625_v23 = vcombine.low %v1616_v42, %v1624_v20  ;;  %v1626_v24 = vcombine.high %v1616_v42, %v1624_v20 }
 0x659   :  { %v1646_v32 = vshrl.u32 %v1599_v22, 16  ;;  %v1607_v34 = vcombine.high %v1599_v22, %v1974_v31  ;;  %v1658_v35 = vshrl.u32 %v1606_v30, 16 }
 0x65a   :  { %v1633_v27 = vrot.slane %v1625_v23, %v2032_v17  ;;  %v1640_v28 = vrot.slane %v1626_v24, %v2032_v17  ;;  %v1608_v17 = vcombine.high %v1606_v30, %v1974_v31 }
 0x65b   :  { %v1652_v26 = vshrl.u32 %v1607_v34, 16 }
 0x65c   :  { %v1647_v16 = vshrl.u32 %v1633_v27, 16  ;;  %v1641_v29 = vcombine.high %v1633_v27, %v1974_v31  ;;  %v1645_v25 = vpack.i.b16 %v1633_v27, %v1599_v22  ;;  %v1657_v53 = vpack.i.b16 %v1640_v28, %v1606_v30 }
 0x65d   :  { %v1659_v50 = vshrl.u32 %v1640_v28, 16  ;;  %v1642_v38 = vcombine.high %v1640_v28, %v1974_v31  ;;  %v1664_v46 = vshrl.u32 %v1608_v17, 16 }
 0x65e   :  { %v1648_v11 = vpack.i.b16 %v1647_v16, %v1646_v32  ;;  %v1651_v33 = vpack.i.b16 %v1641_v29, %v1607_v34  ;;  %v1653_v40 = vshrl.u32 %v1641_v29, 16 }
 0x65f   :  { %v1660_v5 = vpack.i.b16 %v1659_v50, %v1658_v35  ;;  %v1663_v39 = vpack.i.b16 %v1642_v38, %v1608_v17  ;;  %v1665_v44 = vshrl.u32 %v1642_v38, 16 }
 0x660   :  { %1667 = vrot.lane.b32.xlu1 %v1648_v11, %s1979_s6  ;;  %1669 = vrot.lane.b32.xlu0 %v1651_v33, %s1978_s30  ;;  %v1654_v43 = vpack.i.b16 %v1653_v40, %v1652_v26 }
 0x661   :  { %v1666_v60 = vpack.i.b16 %v1665_v44, %v1664_v46 }
 0x664   :  { %1673 = vrot.lane.b32.xlu1 %v1660_v5, %s1979_s6  ;;  %1675 = vrot.lane.b32.xlu0 %v1663_v39, %s1978_s30 }
 0x668   :  { %1671 = vrot.lane.b32.xlu1 %v1654_v43, %s1977_s2 }
 0x66c   :  { %1677 = vrot.lane.b32.xlu1 %v1666_v60, %s1977_s2 }
 0x6d2   :  { %v1668_v36 = vpop.permute.xlu1 %1667  ;;  %v1670_v45 = vpop.permute.xlu0 %1669 }
 0x6d3   :  { %v1681_v4 = vsel %vm156_vm0, %v1645_v25, %v1668_v36 }
 0x6d4   :  { %v1684_v41 = vsel %vm1682_vm12, %v1681_v4, %v1670_v45 }
 0x6d6   :  { %v1674_v47 = vpop.permute.xlu1 %1673  ;;  %v1676_v52 = vpop.permute.xlu0 %1675 }
 0x6d7   :  { %v1690_v12 = vsel %vm156_vm0, %v1657_v53, %v1674_v47 }
 0x6d8   :  { %v1692_v3 = vsel %vm1682_vm12, %v1690_v12, %v1676_v52 }
 0x6da   :  { %v1672_v31 = vpop.permute.xlu1 %1671 }
 0x6db   :  { %v1687_v15 = vsel %vm1685_vm13, %v1684_v41, %v1672_v31 }
 0x6de   :  { %v1678_v37 = vpop.permute.xlu1 %1677 }
 0x6df   :  { %v1694_v18 = vsel %vm1685_vm13, %v1692_v3, %v1678_v37 }
 0x6e0   :  { %v1747_v54 = vcombine.low %v1687_v15, %v1694_v18 }
 0x6e2   :  { %1701 = vst [vmem:[%s2409_s5] sm:$0xff] %v1747_v54 }

// kernel: _lambda_.3
= control target key start
LH: loop header
LB: loop body
LE: loop exit
PB: predicated region body
PF: predicated region fallthrough
CT: control target
= control target key end

     0   :  { %s2322_s18 = smov 0   ;;  %s2324_s19 = smov 0   ;;  %s2731_s0 = inlined_call_operand.vmem [shape: bf16[4,16,8], index: 0, kind: input, shape index: {}]   ;;  %s2732_s1 = inlined_call_operand.vmem [shape: bf16[8,128], index: 1, kind: input, shape index: {}]   ;;  %s2733_s2 = inlined_call_operand.vmem [shape: f32[1,128], index: 2, kind: input, shape index: {}]   ;;  %s2734_s3 = inlined_call_operand.vmem [shape: f32[1,32], index: 3, kind: input, shape index: {}]   ;;  %s2735_s4 = inlined_call_operand.vmem [shape: f32[1,32], index: 4, kind: input, shape index: {}]   ;;  %s2736_s5 = inlined_call_operand.vmem [shape: bf16[4,512], index: 5, kind: output, shape index: {}]  }
   0x1   :  { %s2326_s20 = smov 0  }
   0x2 LB: > { %s1978_s21 = sadd.s32 4294967295, %s2282_s20   ;;  %s2339_s22 = sadd.s32 1, %s2282_s20   ;;  %s2282_s20 = sphi %s2326_s20, %s2739_s20   ;;  %s2278_s19 = sphi %s2324_s19, %s2738_s19   ;;  %s2274_s18 = sphi %s2322_s18, %s2737_s18  }
   0x3   : > { %s19_s23 = ssub.s32 %s2282_s20, %s2339_s22  ;;  %s22_s24 = sadd.s32 1, %s2278_s19 }
   0x4   : > { %p20_p0 = scmp.eq.s32.totalorder %s19_s23, 0  ;;  %p29_p1 = scmp.ne.s32.totalorder %s2278_s19, %s2274_s18 }
   0x5   : > { %p30_p2 = scmp.eq.s32.totalorder %s2282_s20, 0  ;;  %p1981_p4 = scmp.ge.s32.totalorder %s2282_s20, 2 }
   0x6   : > { %s2348_s25 = scalar_select %p20_p0, %s2278_s19, %s22_s24  }
   0x7   : > { %p31_p3 = por %p30_p2, %p29_p1  ;;  %177 = sbr.rel (%p1981_p4) target bundleno = 21 (0x15), region = 32 }
   0xe   : > { %180 = sbr.rel (!%p31_p3) target bundleno = 21 (0x15), region = 36  ;;  %s182_s26 = sand.u32 (%p31_p3), 1, %s2278_s19  }
   0xf   : > { %s1983_s27 = sshll.u32 (%p31_p3), %s2282_s20, 2  ;;  %s1982_s28 = sshll.u32 (%p31_p3), %s182_s26, 4 }
  0x10   : > { %s186_s6 = scalar_lea.vmem (%p31_p3), %s2731_s0, %s1983_s27  ;;  %s184_s7 = scalar_lea.vmem (%p31_p3), [#allocation2], %s1982_s28 }
  0x11   : > { %v202_v0 = vld [vmem:[%s186_s6] sm:$0xf] (%p31_p3)  ;;  %v204_v1 = vld [vmem:[%s186_s6 + $0x8] sm:$0xf] (%p31_p3)  ;;  %v206_v2 = vld [vmem:[%s186_s6 + $0x10] sm:$0xf] (%p31_p3) }
  0x12   : > { %203 = vst [vmem:[%s184_s7] sm:$0xf] (%p31_p3), %v202_v0  ;;  %205 = vst [vmem:[%s184_s7 + $0x4] sm:$0xf] (%p31_p3), %v204_v1  ;;  %v208_v3 = vld [vmem:[%s186_s6 + $0x18] sm:$0xf] (%p31_p3) }
  0x13   : > { %207 = vst [vmem:[%s184_s7 + $0x8] sm:$0xf] (%p31_p3), %v206_v2  ;;  %209 = vst [vmem:[%s184_s7 + $0xc] sm:$0xf] (%p31_p3), %v208_v3 }
  0x15 PF: > { %p1984_p5 = scmp.ge.s32.totalorder %s2282_s20, 1  ;;  %p239_p6 = scmp.lt.s32.totalorder %s2282_s20, 3 }
  0x17   : > { %p240_p7 = pnand %p1984_p5, %p239_p6 }
  0x18   : > { %v364_v4 = vld [vmem:[%s2732_s1] sm:$0xf] (!%p240_p7)  ;;  %vm421_vm0 = vcmask (!%p240_p7), 1043456   ;;  %s246_s10 = sand.u32 (!%p240_p7), 1, %s2274_s18   ;;  %v300_v5 = vlaneseq (!%p240_p7)  ;;  %v2284_v7 = vmov (!%p240_p7), 1983009808  }
  0x19   : > { %243 = sbr.rel (%p240_p7) target bundleno = 1770 (0x6ea), region = 77  ;;  %2163 = vmatprep.subr.msk.bf16.mxu0 (!%p240_p7), %vm421_vm0, %v364_v4  ;;  %v423_v6 = vsel (!%p240_p7), %vm421_vm0, %v364_v4, 0  ;;  %s1985_s11 = sshll.u32 (!%p240_p7), %s246_s10, 4  ;;  %v298_v8 = vunpack.c.l.s4 (!%p240_p7), %v2284_v7  ;;  %v2285_v10 = vmov (!%p240_p7), 1934713408   ;;  %vm414_vm1 = vcmask (!%p240_p7), 64512  }
  0x1a   : > { %2062 = vmatpush3.bf16.msra.mxu0 (!%p240_p7), %v423_v6  ;;  %v301_v9 = vshrl.u32 (!%p240_p7), %v300_v5, 7  ;;  %v315_v11 = vunpack.c.l.s4 (!%p240_p7), %v2285_v10  ;;  %s248_s12 = scalar_lea.vmem (!%p240_p7), [#allocation2], %s1985_s11  ;;  %v2286_v50 = vmov (!%p240_p7), 0.0   ;;  %vm2287_vm2 = vmmov (!%p240_p7), 0   ;;  %v1988_v51 = vld [vmem:[%s2733_s2] ss:$0 sm:$0xff] (!%p240_p7) }
  0x1b   : > { %v280_v12 = vld [vmem:[%s248_s12] sm:$0xf] (!%p240_p7)  ;;  %v281_v13 = vld [vmem:[%s248_s12 + $0x4] sm:$0xf] (!%p240_p7)  ;;  %v282_v14 = vld [vmem:[%s248_s12 + $0x8] sm:$0xf] (!%p240_p7)  ;;  %v299_v15 = vunpack.c.0.s8 (!%p240_p7), %v298_v8  ;;  %2067 = vmatprep.subr.bf16.mxu1 (!%p240_p7), %v2286_v50  ;;  %2073 = vmatprep.subr.bf16.mxu0 (!%p240_p7), %v2286_v50 }
  0x1c   : > { %v283_v16 = vld [vmem:[%s248_s12 + $0xc] sm:$0xf] (!%p240_p7)  ;;  %v286_v17 = vpack.i.b16 (!%p240_p7), %v281_v13, %v280_v12  ;;  %v287_v18 = vshrl.u32 (!%p240_p7), %v280_v12, 16  ;;  %v288_v19 = vshrl.u32 (!%p240_p7), %v281_v13, 16  ;;  %v293_v20 = vshrl.u32 (!%p240_p7), %v282_v14, 16  ;;  %2069 = vmatprep.mubr.msk.bf16.mxu1 (!%p240_p7), %vm2287_vm2, %v2286_v50  ;;  %s2288_s15 = smov (!%p240_p7), 96  }
  0x1d   : > { %v292_v21 = vpack.i.b16 (!%p240_p7), %v283_v16, %v282_v14  ;;  %v294_v22 = vshrl.u32 (!%p240_p7), %v283_v16, 16  ;;  %v2362_v23 = vsub.s32 (!%p240_p7), %v299_v15, %v301_v9  ;;  %v316_v24 = vunpack.c.0.s8 (!%p240_p7), %v315_v11  ;;  %s2289_s16 = smov (!%p240_p7), 64   ;;  %s2290_s17 = smov (!%p240_p7), 32  }
  0x1e   : > { %v289_v25 = vpack.i.b16 (!%p240_p7), %v288_v19, %v287_v18  ;;  %vm497_vm3 = vcmask (!%p240_p7), 261120   ;;  %vm895_vm4 = vcmask (!%p240_p7), 27648   ;;  %vm1017_vm5 = vcmask (!%p240_p7), 1041408   ;;  %s1986_s27 = sshll.u32 (!%p240_p7), %s1978_s21, 1 }
  0x1f   : > { %v295_v26 = vpack.i.b16 (!%p240_p7), %v294_v22, %v293_v20  ;;  %v303_v27 = vrot.slane (!%p240_p7), %v286_v17, %v2362_v23  ;;  %v311_v28 = vrot.slane (!%p240_p7), %v292_v21, %v2362_v23  ;;  %v2366_v29 = vsub.s32 (!%p240_p7), %v316_v24, %v301_v9  ;;  %p274_p8 = scmp.lt.s32.totalorder (!%p240_p7), %s1986_s27, 3 }
  0x20   : > { %v337_v30 = vrot.slane %v289_v25, %v2362_v23  ;;  %vm1013_vm6 = vcmask 31744   ;;  %vm1530_vm7 = vcmask 257024   ;;  %vm1891_vm0 = vcmask 523264  }
  0x21   : > { %v312_v31 = vcombine.low %v303_v27, %v311_v28  ;;  %v313_v32 = vcombine.high %v303_v27, %v311_v28  ;;  %v345_v33 = vrot.slane %v295_v26, %v2362_v23  ;;  %s2741_s27 = smov (!%p274_p8, %s1986_s27), 3 }
  0x22   : > { %s1987_s28 = sshll.u32 %s2741_s27, 1 }
  0x23   : > { %v320_v34 = vrot.slane %v312_v31, %v2366_v29  ;;  %v346_v35 = vcombine.low %v337_v30, %v345_v33  ;;  %v347_v36 = vcombine.high %v337_v30, %v345_v33  ;;  %v327_v37 = vrot.slane %v313_v32, %v2366_v29  ;;  %s277_s29 = scalar_lea.vmem %s2736_s5, %s1987_s28 }
  0x25   : > { %v354_v38 = vrot.slane %v346_v35, %v2366_v29  ;;  %v361_v39 = vrot.slane %v347_v36, %v2366_v29 }
  0x27   : > { %v380_v40 = vcombine.low %v320_v34, %v354_v38  ;;  %v1989_v41 = vcombine.high %v320_v34, %v354_v38  ;;  %v397_v42 = vcombine.low %v327_v37, %v361_v39  ;;  %v1990_v43 = vcombine.high %v327_v37, %v361_v39 }
  0x29   : > { %v388_v44 = vrot.slane %v380_v40, %v2362_v23  ;;  %v395_v45 = vrot.slane %v1989_v41, %v2362_v23  ;;  %v405_v46 = vrot.slane %v397_v42, %v2362_v23  ;;  %v412_v47 = vrot.slane %v1990_v43, %v2362_v23 }
  0x2b   : > { %v396_v48 = vcombine.low %v388_v44, %v395_v45  ;;  %v413_v49 = vcombine.low %v405_v46, %v412_v47 }
  0x2d   : > { %2063 = vmatprep.mubr.msk.bf16.mxu0 %vm414_vm1, %v396_v48 }
  0x2e   : > { %2064 = vmatmul.mubr.msk.bf16.vlgmr.msra.gmra.mrb[0].mxu0 %vm414_vm1, %v413_v49  ;;  %vm1894_vm1 = vcmask 785408  }
  0x2f   : > { %2075 = vmatprep.mubr.msk.bf16.mxu0 %vm2287_vm2, %v2286_v50 }
 0x101   : > { %v2065_v52 = vpop.f32.mrb[0].mxu0 }
 0x102   : > { %v459_v53 = vpop.f32.mrb[1].mxu0  ;;  %v2399_v60 = vadd.f32 %v2065_v52, %v1988_v51 }
 0x103   : > { %v2387_v54 = vadd.f32 %v1988_v51, %v459_v53  ;;  %v2066_v55 = vpop.f32.mrb[2].mxu0 }
 0x104   : > { %v462_v56 = vpop.f32.mrb[3].mxu0  ;;  %v2424_v2 = vcombine.high %v2399_v60, %v2399_v60  ;;  %v2426_v3 = vadd.f32 %v2066_v55, %v1988_v51  ;;  %v2439_v5 = vpack.c.bf16 %v2399_v60, %v2399_v60 }
 0x105   : > { %v2391_v57 = vcombine.high %v2387_v54, %v2387_v54  ;;  %v2393_v58 = vadd.f32 %v1988_v51, %v462_v56  ;;  %v2397_v59 = vpack.c.bf16 %v2387_v54, %v2387_v54 }
 0x106   : > { %v2443_v6 = vcombine.high %v2426_v3, %v2426_v3  ;;  %v2449_v7 = vpack.c.bf16 %v2424_v2, %v2424_v2  ;;  %v2455_v8 = vpack.c.bf16 %v2426_v3, %v2426_v3  ;;  %v698_v15 = vsel %vm497_vm3, %v2439_v5, 0 }
 0x107   : > { %v2403_v61 = vpack.c.bf16 %v2391_v57, %v2391_v57  ;;  %v2407_v62 = vcombine.high %v2393_v58, %v2393_v58  ;;  %495 = vrot.lane.b32.xlu0 %v2397_v59, %s2288_s15  ;;  %v502_v63 = vsel %vm497_vm3, %v2397_v59, 0  ;;  %v2415_v0 = vpack.c.bf16 %v2393_v58, %v2393_v58 }
 0x108   : > { %2068 = vmatpush3.bf16.xpose.msra.mxu1 %v502_v63  ;;  %v2461_v9 = vpack.c.bf16 %v2443_v6, %v2443_v6  ;;  %v747_v17 = vsel %vm497_vm3, %v2449_v7, 0  ;;  %v796_v19 = vsel %vm497_vm3, %v2455_v8, 0 }
 0x109   : > { %594 = vrot.lane.b32.xlu1 %v2415_v0, %s2288_s15  ;;  %v551_v1 = vsel %vm497_vm3, %v2403_v61, 0  ;;  %2079 = vmatprep.subr.bf16.mxu1 %v2286_v50  ;;  %v2432_v4 = vpack.c.bf16 %v2407_v62, %v2407_v62  ;;  %v600_v11 = vsel %vm497_vm3, %v2415_v0, 0 }
 0x10a   : > { %2074 = vmatpush3.bf16.xpose.msra.mxu0 %v551_v1  ;;  %v845_v21 = vsel %vm497_vm3, %v2461_v9, 0 }
 0x10b   : > { %545 = vrot.lane.b32.xlu0 %v2403_v61, %s2288_s15  ;;  %2085 = vmatprep.subr.bf16.mxu0 %v2286_v50  ;;  %v649_v13 = vsel %vm497_vm3, %v2432_v4, 0 }
 0x10d   : > { %643 = vrot.lane.b32.xlu1 %v2432_v4, %s2288_s15 }
 0x10f   : > { %692 = vrot.lane.b32.xlu0 %v2439_v5, %s2288_s15 }
 0x111   : > { %741 = vrot.lane.b32.xlu1 %v2449_v7, %s2288_s15 }
 0x113   : > { %790 = vrot.lane.b32.xlu0 %v2455_v8, %s2288_s15 }
 0x115   : > { %839 = vrot.lane.b32.xlu1 %v2461_v9, %s2288_s15 }
 0x179   : > { %v496_v10 = vpop.permute.xlu0 %495 }
 0x17a   : > { %2070 = vmatmul.mubr.msk.bf16.vlgmr.msra.gmra.mrb[0].mxu1 %vm497_vm3, %v496_v10 }
 0x17b   : > { %2080 = vmatpush3.bf16.xpose.msra.mxu1 %v600_v11  ;;  %2081 = vmatprep.mubr.msk.bf16.mxu1 %vm2287_vm2, %v2286_v50  ;;  %v595_v14 = vpop.permute.xlu1 %594 }
 0x17c   : > { %2091 = vmatprep.subr.bf16.mxu1 %v2286_v50 }
 0x17d   : > { %v546_v12 = vpop.permute.xlu0 %545 }
 0x17e   : > { %2076 = vmatmul.mubr.msk.bf16.vlgmr.msra.gmra.mrb[4].mxu0 %vm497_vm3, %v546_v12 }
 0x17f   : > { %2086 = vmatpush3.bf16.xpose.msra.mxu0 %v649_v13  ;;  %2087 = vmatprep.mubr.msk.bf16.mxu0 %vm2287_vm2, %v2286_v50  ;;  %v644_v16 = vpop.permute.xlu1 %643 }
 0x180   : > { %2097 = vmatprep.subr.bf16.mxu0 %v2286_v50 }
 0x181   : > { %v693_v18 = vpop.permute.xlu0 %692 }
 0x182   : > { %2082 = vmatmul.mubr.msk.bf16.vlgmr.msra.gmra.mrb[4].mxu1 %vm497_vm3, %v595_v14 }
 0x183   : > { %2092 = vmatpush3.bf16.xpose.msra.mxu1 %v698_v15  ;;  %2093 = vmatprep.mubr.msk.bf16.mxu1 %vm2287_vm2, %v2286_v50  ;;  %v742_v20 = vpop.permute.xlu1 %741 }
 0x184   : > { %2103 = vmatprep.subr.bf16.mxu1 %v2286_v50 }
 0x185   : > { %v791_v22 = vpop.permute.xlu0 %790 }
 0x186   : > { %2088 = vmatmul.mubr.msk.bf16.vlgmr.msra.gmra.mrb[8].mxu0 %vm497_vm3, %v644_v16 }
 0x187   : > { %2098 = vmatpush3.bf16.xpose.msra.mxu0 %v747_v17  ;;  %2099 = vmatprep.mubr.msk.bf16.mxu0 %vm2287_vm2, %v2286_v50  ;;  %v840_v24 = vpop.permute.xlu1 %839 }
 0x188   : > { %2109 = vmatprep.subr.bf16.mxu0 %v2286_v50 }
 0x18a   : > { %2094 = vmatmul.mubr.msk.bf16.vlgmr.msra.gmra.mrb[8].mxu1 %vm497_vm3, %v693_v18 }
 0x18b   : > { %2104 = vmatpush3.bf16.xpose.msra.mxu1 %v796_v19  ;;  %2105 = vmatprep.mubr.msk.bf16.mxu1 %vm2287_vm2, %v2286_v50 }
 0x18c   : > { %2115 = vmatprep.subr.bf16.mxu1 %v2286_v50 }
 0x18e   : > { %2100 = vmatmul.mubr.msk.bf16.vlgmr.msra.gmra.mrb[12].mxu0 %vm497_vm3, %v742_v20 }
 0x18f   : > { %2110 = vmatpush3.bf16.xpose.msra.mxu0 %v845_v21  ;;  %2111 = vmatprep.mubr.msk.bf16.mxu0 %vm2287_vm2, %v2286_v50 }
 0x190   : > { %2121 = vmatprep.subr.bf16.mxu0 %v2286_v50 }
 0x192   : > { %2106 = vmatmul.mubr.msk.bf16.vlgmr.msra.gmra.mrb[12].mxu1 %vm497_vm3, %v791_v22 }
 0x193   : > { %2117 = vmatprep.mubr.msk.bf16.mxu1 %vm2287_vm2, %v2286_v50 }
 0x196   : > { %2112 = vmatmul.mubr.msk.bf16.vlgmr.msra.gmra.mrb[16].mxu0 %vm497_vm3, %v840_v24 }
 0x197   : > { %2123 = vmatprep.mubr.msk.bf16.mxu0 %vm2287_vm2, %v2286_v50 }
 0x24d   : > { %v538_v25 = vpop.f32.mrb[0].mxu1 }
 0x24e   : > { %v2507_v26 = vmul.f32 0.17677669, %v538_v25  ;;  %v2071_v27 = vpop.f32.mrb[1].mxu1 }
 0x24f   : > { %v541_v28 = vpop.f32.mrb[2].mxu1 }
 0x250   : > { %v2072_v30 = vpop.f32.mrb[3].mxu1  ;;  %v896_v31 = vsel %vm895_vm4, %v2507_v26, -inf }
 0x251   : > { %897 = vmax.xlane.f32.xlu0 %v896_v31  ;;  %v587_v32 = vpop.f32.mrb[4].mxu0 }
 0x252   : > { %v888_v33 = vmul.f32 0.17677669, %v587_v32  ;;  %v2077_v34 = vpop.f32.mrb[5].mxu0 }
 0x253   : > { %v590_v35 = vpop.f32.mrb[6].mxu0 }
 0x254   : > { %v2078_v36 = vpop.f32.mrb[7].mxu0  ;;  %v899_v37 = vsel %vm895_vm4, %v888_v33, -inf }
 0x255   : > { %v636_v38 = vpop.f32.mrb[4].mxu1  ;;  %900 = vmax.xlane.f32.xlu1 %v899_v37 }
 0x256   : > { %v889_v39 = vmul.f32 0.17677669, %v636_v38  ;;  %v2083_v40 = vpop.f32.mrb[5].mxu1 }
 0x257   : > { %v639_v41 = vpop.f32.mrb[6].mxu1 }
 0x258   : > { %v2084_v42 = vpop.f32.mrb[7].mxu1  ;;  %v902_v43 = vsel %vm895_vm4, %v889_v39, -inf }
 0x259   : > { %903 = vmax.xlane.f32.xlu0 %v902_v43  ;;  %v685_v44 = vpop.f32.mrb[8].mxu0 }
 0x25a   : > { %v890_v45 = vmul.f32 0.17677669, %v685_v44  ;;  %v2089_v46 = vpop.f32.mrb[9].mxu0 }
 0x25b   : > { %v688_v47 = vpop.f32.mrb[10].mxu0 }
 0x25c   : > { %v2090_v48 = vpop.f32.mrb[11].mxu0  ;;  %v905_v49 = vsel %vm895_vm4, %v890_v45, -inf }
 0x25d   : > { %v734_v51 = vpop.f32.mrb[8].mxu1  ;;  %906 = vmax.xlane.f32.xlu0 %v905_v49 }
 0x25e   : > { %v891_v52 = vmul.f32 0.17677669, %v734_v51  ;;  %v2095_v53 = vpop.f32.mrb[9].mxu1 }
 0x25f   : > { %v737_v55 = vpop.f32.mrb[10].mxu1 }
 0x260   : > { %v2096_v56 = vpop.f32.mrb[11].mxu1  ;;  %v908_v63 = vsel %vm895_vm4, %v891_v52, -inf }
 0x261   : > { %909 = vmax.xlane.f32.xlu1 %v908_v63  ;;  %v783_v1 = vpop.f32.mrb[12].mxu0 }
 0x262   : > { %v892_v10 = vmul.f32 0.17677669, %v783_v1  ;;  %v2101_v11 = vpop.f32.mrb[13].mxu0 }
 0x263   : > { %v786_v12 = vpop.f32.mrb[14].mxu0 }
 0x264   : > { %v2102_v13 = vpop.f32.mrb[15].mxu0  ;;  %v911_v14 = vsel %vm895_vm4, %v892_v10, -inf }
 0x265   : > { %v832_v15 = vpop.f32.mrb[12].mxu1  ;;  %912 = vmax.xlane.f32.xlu0 %v911_v14 }
 0x266   : > { %v893_v16 = vmul.f32 0.17677669, %v832_v15  ;;  %v2107_v17 = vpop.f32.mrb[13].mxu1 }
 0x267   : > { %v835_v18 = vpop.f32.mrb[14].mxu1 }
 0x268   : > { %v2108_v19 = vpop.f32.mrb[15].mxu1  ;;  %v914_v20 = vsel %vm895_vm4, %v893_v16, -inf }
 0x269   : > { %915 = vmax.xlane.f32.xlu1 %v914_v20  ;;  %v881_v21 = vpop.f32.mrb[16].mxu0 }
 0x26a   : > { %v894_v22 = vmul.f32 0.17677669, %v881_v21  ;;  %v2113_v24 = vpop.f32.mrb[17].mxu0 }
 0x26b   : > { %v884_v25 = vpop.f32.mrb[18].mxu0 }
 0x26c   : > { %v2114_v27 = vpop.f32.mrb[19].mxu0  ;;  %v917_v28 = vsel %vm895_vm4, %v894_v22, -inf }
 0x26d   : > { %918 = vmax.xlane.f32.xlu0 %v917_v28 }
 0x27a   : > { %1008 = vrot.lane.b32.xlu1 %v2397_v59, %s2289_s16 }
 0x27e   : > { %1144 = vrot.lane.b32.xlu1 %v2415_v0, %s2289_s16 }
 0x282   : > { %1211 = vrot.lane.b32.xlu1 %v2432_v4, %s2289_s16 }
 0x283   : > { %1077 = vrot.lane.b32.xlu0 %v2403_v61, %s2289_s16 }
 0x286   : > { %1345 = vrot.lane.b32.xlu1 %v2449_v7, %s2289_s16 }
 0x287   : > { %1278 = vrot.lane.b32.xlu0 %v2439_v5, %s2289_s16 }
 0x2de   : > { %v898_v30 = vpop.xlane.xlu0 %897 }
 0x2df   : > { %v920_v31 = vsub.f32 %v2507_v26, %v898_v30 }
 0x2e1   : > { %v928_v32 = vmul.f32 1.442695, %v920_v31 }
 0x2e2   : > { %v901_v59 = vpop.xlane.xlu1 %900 }
 0x2e3   : > { %2196 = vpow2.f32 %v928_v32  ;;  %v921_v34 = vsub.f32 %v888_v33, %v901_v59 }
 0x2e5   : > { %v930_v0 = vmul.f32 1.442695, %v921_v34 }
 0x2e6   : > { %v904_v35 = vpop.xlane.xlu0 %903 }
 0x2e7   : > { %2198 = vpow2.f32 %v930_v0  ;;  %v922_v4 = vsub.f32 %v889_v39, %v904_v35 }
 0x2e9   : > { %v932_v36 = vmul.f32 1.442695, %v922_v4 }
 0x2ea   : > { %v907_v37 = vpop.xlane.xlu0 %906 }
 0x2eb   : > { %2200 = vpow2.f32 %v932_v36  ;;  %v923_v61 = vsub.f32 %v890_v45, %v907_v37 }
 0x2ed   : > { %v2197_v38 = vpop.eup %2196  ;;  %v934_v7 = vmul.f32 1.442695, %v923_v61 }
 0x2ee   : > { %v910_v40 = vpop.xlane.xlu1 %909  ;;  %v944_v5 = vsel %vm895_vm4, %v2197_v38, 0.0 }
 0x2ef   : > { %2202 = vpow2.f32 %v934_v7  ;;  %v924_v41 = vsub.f32 %v891_v52, %v910_v40  ;;  %945 = vadd.xlane.f32.xlu1 %v944_v5 }
 0x2f1   : > { %v2199_v26 = vpop.eup %2198  ;;  %v936_v42 = vmul.f32 1.442695, %v924_v41 }
 0x2f2   : > { %v913_v43 = vpop.xlane.xlu0 %912  ;;  %v947_v33 = vsel %vm895_vm4, %v2199_v26, 0.0 }
 0x2f3   : > { %2204 = vpow2.f32 %v936_v42  ;;  %v925_v44 = vsub.f32 %v892_v10, %v913_v43  ;;  %948 = vadd.xlane.f32.xlu0 %v947_v33 }
 0x2f5   : > { %v2533_v39 = vpop.eup %2200  ;;  %v938_v46 = vmul.f32 1.442695, %v925_v44 }
 0x2f6   : > { %v916_v45 = vpop.xlane.xlu1 %915  ;;  %v950_v47 = vsel %vm895_vm4, %v2533_v39, 0.0 }
 0x2f7   : > { %2206 = vpow2.f32 %v938_v46  ;;  %v926_v48 = vsub.f32 %v893_v16, %v916_v45  ;;  %951 = vadd.xlane.f32.xlu1 %v950_v47 }
 0x2f9   : > { %v2537_v49 = vpop.eup %2202  ;;  %v940_v51 = vmul.f32 1.442695, %v926_v48 }
 0x2fa   : > { %v1009_v52 = vpop.permute.xlu1 %1008  ;;  %v919_v53 = vpop.xlane.xlu0 %918  ;;  %v953_v55 = vsel %vm895_vm4, %v2537_v49, 0.0 }
 0x2fb   : > { %2208 = vpow2.f32 %v940_v51  ;;  %v1019_v56 = vsel %vm1017_vm5, %v1009_v52, 0  ;;  %v927_v63 = vsub.f32 %v894_v22, %v919_v53  ;;  %954 = vadd.xlane.f32.xlu0 %v953_v55 }
 0x2fc   : > { %2116 = vmatpush3.bf16.msra.mxu1 %v1019_v56 }
 0x2fd   : > { %v2205_v1 = vpop.eup %2204  ;;  %v942_v10 = vmul.f32 1.442695, %v927_v63  ;;  %2127 = vmatprep.subr.bf16.mxu1 %v2286_v50 }
 0x2fe   : > { %v1078_v11 = vpop.permute.xlu0 %1077  ;;  %v956_v12 = vsel %vm895_vm4, %v2205_v1, 0.0  ;;  %v2549_v20 = vpop.permute.xlu1 %1144 }
 0x2ff   : > { %2210 = vpow2.f32 %v942_v10  ;;  %v1086_v13 = vsel %vm1017_vm5, %v1078_v11, 0  ;;  %957 = vadd.xlane.f32.xlu1 %v956_v12 }
 0x300   : > { %2122 = vmatpush3.bf16.msra.mxu0 %v1086_v13 }
 0x301   : > { %v2207_v14 = vpop.eup %2206  ;;  %2133 = vmatprep.subr.bf16.mxu0 %v2286_v50 }
 0x302   : > { %v959_v15 = vsel %vm895_vm4, %v2207_v14, 0.0  ;;  %v2551_v21 = vpop.permute.xlu1 %1211  ;;  %v2555_v24 = vpop.permute.xlu0 %1278 }
 0x303   : > { %960 = vadd.xlane.f32.xlu0 %v959_v15 }
 0x305   : > { %v2209_v16 = vpop.eup %2208 }
 0x306   : > { %v962_v17 = vsel %vm895_vm4, %v2209_v16, 0.0  ;;  %v2553_v22 = vpop.permute.xlu1 %1345 }
 0x307   : > { %963 = vadd.xlane.f32.xlu1 %v962_v17  ;;  %v1354_v53 = vsel %vm1017_vm5, %v2553_v22, 0 }
 0x309   : > { %v2211_v18 = vpop.eup %2210 }
 0x30a   : > { %v965_v19 = vsel %vm895_vm4, %v2211_v18, 0.0 }
 0x30b   : > { %966 = vadd.xlane.f32.xlu0 %v965_v19 }
 0x37c   : > { %v946_v25 = vpop.xlane.xlu1 %945 }
 0x37d   : > { %2212 = vrcp.f32 %v946_v25 }
 0x380   : > { %v949_v27 = vpop.xlane.xlu0 %948 }
 0x381   : > { %2214 = vrcp.f32 %v949_v27 }
 0x384   : > { %v952_v0 = vpop.xlane.xlu1 %951 }
 0x385   : > { %2216 = vrcp.f32 %v952_v0 }
 0x387   : > { %v2213_v28 = vpop.eup %2212 }
 0x388   : > { %v969_v30 = vmul.f32 %v2213_v28, %v2197_v38  ;;  %v955_v35 = vpop.xlane.xlu0 %954 }
 0x389   : > { %2218 = vrcp.f32 %v955_v35 }
 0x38a   : > { %v984_v31 = vpack.c.bf16 %v969_v30, %v969_v30 }
 0x38b   : > { %v2215_v32 = vpop.eup %2214 }
 0x38c   : > { %992 = vxpose.xlu0.c.b16.start.end [1/1] (short) (narrow) %v984_v31, 16  ;;  %v971_v59 = vmul.f32 %v2215_v32, %v2199_v26  ;;  %v958_v4 = vpop.xlane.xlu1 %957 }
 0x38d   : > { %2220 = vrcp.f32 %v958_v4 }
 0x38e   : > { %v985_v34 = vpack.c.bf16 %v971_v59, %v971_v59 }
 0x38f   : > { %v2217_v38 = vpop.eup %2216 }
 0x390   : > { %1061 = vxpose.xlu1.c.b16.start.end [1/1] (short) (narrow) %v985_v34, 16  ;;  %v961_v36 = vpop.xlane.xlu0 %960  ;;  %v973_v40 = vmul.f32 %v2217_v38, %v2533_v39 }
 0x391   : > { %2222 = vrcp.f32 %v961_v36 }
 0x392   : > { %v986_v41 = vpack.c.bf16 %v973_v40, %v973_v40 }
 0x393   : > { %v2219_v7 = vpop.eup %2218 }
 0x394   : > { %1479 = vrot.lane.b32.xlu1 %v2461_v9, %s2289_s16  ;;  %v964_v37 = vpop.xlane.xlu1 %963  ;;  %v975_v26 = vmul.f32 %v2219_v7, %v2537_v49 }
 0x395   : > { %1412 = vrot.lane.b32.xlu0 %v2455_v8, %s2289_s16  ;;  %2224 = vrcp.f32 %v964_v37 }
 0x396   : > { %v987_v33 = vpack.c.bf16 %v975_v26, %v975_v26 }
 0x397   : > { %v2221_v9 = vpop.eup %2220 }
 0x398   : > { %v967_v61 = vpop.xlane.xlu0 %966  ;;  %v977_v8 = vmul.f32 %v2221_v9, %v2205_v1 }
 0x399   : > { %2226 = vrcp.f32 %v967_v61 }
 0x39a   : > { %v988_v43 = vpack.c.bf16 %v977_v8, %v977_v8 }
 0x39b   : > { %v2223_v5 = vpop.eup %2222 }
 0x39c   : > { %v979_v46 = vmul.f32 %v2223_v5, %v2207_v14 }
 0x39e   : > { %v989_v48 = vpack.c.bf16 %v979_v46, %v979_v46 }
 0x39f   : > { %v2225_v42 = vpop.eup %2224 }
 0x3a0   : > { %v981_v44 = vmul.f32 %v2225_v42, %v2209_v16 }
 0x3a2   : > { %v990_v47 = vpack.c.bf16 %v981_v44, %v981_v44 }
 0x3a3   : > { %v2227_v45 = vpop.eup %2226 }
 0x3a4   : > { %v983_v51 = vmul.f32 %v2227_v45, %v2211_v18 }
 0x3a6   : > { %v991_v39 = vpack.c.bf16 %v983_v51, %v983_v51 }
 0x3b3   : > { %1128 = vxpose.xlu0.c.b16.start.end [1/1] (short) (narrow) %v986_v41, 16 }
 0x3b7   : > { %1262 = vxpose.xlu0.c.b16.start.end [1/1] (short) (narrow) %v988_v43, 16  ;;  %1195 = vxpose.xlu1.c.b16.start.end [1/1] (short) (narrow) %v987_v33, 16 }
 0x3bb   : > { %1396 = vxpose.xlu1.c.b16.start.end [1/1] (short) (narrow) %v990_v47, 16  ;;  %1329 = vxpose.xlu0.c.b16.start.end [1/1] (short) (narrow) %v989_v48, 16 }
 0x3bf   : > { %1010 = vrot.lane.b32.xlu1 %v2387_v54, %s2290_s17  ;;  %1463 = vxpose.xlu0.c.b16.start.end [1/1] (short) (narrow) %v991_v39, 16 }
 0x3c3   : > { %1146 = vrot.lane.b32.xlu1 %v2393_v58, %s2290_s17  ;;  %v1153_v58 = vsel %vm1017_vm5, %v2549_v20, 0 }
 0x3c7   : > { %1213 = vrot.lane.b32.xlu1 %v2407_v62, %s2290_s17 }
 0x3c8   : > { %1079 = vrot.lane.b32.xlu0 %v2391_v57, %s2290_s17 }
 0x3cb   : > { %1347 = vrot.lane.b32.xlu1 %v2424_v2, %s2290_s17 }
 0x3cc   : > { %1280 = vrot.lane.b32.xlu0 %v2399_v60, %s2290_s17  ;;  %v1220_v60 = vsel %vm1017_vm5, %v2551_v21, 0 }
 0x3cf   : > { %1481 = vrot.lane.b32.xlu1 %v2443_v6, %s2290_s17  ;;  %v1287_v6 = vsel %vm1017_vm5, %v2555_v24, 0 }
 0x3d0   : > { %1414 = vrot.lane.b32.xlu0 %v2426_v3, %s2290_s17 }
 0x3f2   : > { %v1000_v54 = vpop.trf.xlu0 }
 0x3f3   : > { %2118 = vmatmul.mubr.msk.bf16.vlgmr.msra.gmra.mrb[16].mxu1 %vm1013_vm6, %v1000_v54 }
 0x3f4   : > { %2128 = vmatpush3.bf16.msra.mxu1 %v1153_v58  ;;  %2129 = vmatprep.mubr.msk.bf16.mxu1 %vm2287_vm2, %v2286_v50 }
 0x3f5   : > { %2139 = vmatprep.subr.bf16.mxu1 %v2286_v50 }
 0x3f6   : > { %v1069_v57 = vpop.trf.xlu1 }
 0x3f7   : > { %2124 = vmatmul.mubr.msk.bf16.vlgmr.msra.gmra.mrb[20].mxu0 %vm1013_vm6, %v1069_v57 }
 0x3f8   : > { %2134 = vmatpush3.bf16.msra.mxu0 %v1220_v60  ;;  %2135 = vmatprep.mubr.msk.bf16.mxu0 %vm2287_vm2, %v2286_v50 }
 0x3f9   : > { %2145 = vmatprep.subr.bf16.mxu0 %v2286_v50 }
 0x406   : > { %v1480_v2 = vpop.permute.xlu1 %1479 }
 0x407   : > { %v1413_v62 = vpop.permute.xlu0 %1412  ;;  %v1488_v63 = vsel %vm1017_vm5, %v1480_v2, 0 }
 0x408   : > { %v1421_v55 = vsel %vm1017_vm5, %v1413_v62, 0 }
 0x419   : > { %v1136_v3 = vpop.trf.xlu0 }
 0x41a   : > { %2130 = vmatmul.mubr.msk.bf16.vlgmr.msra.gmra.mrb[20].mxu1 %vm1013_vm6, %v1136_v3 }
 0x41b   : > { %2140 = vmatpush3.bf16.msra.mxu1 %v1287_v6  ;;  %2141 = vmatprep.mubr.msk.bf16.mxu1 %vm2287_vm2, %v2286_v50 }
 0x41c   : > { %2151 = vmatprep.subr.bf16.mxu1 %v2286_v50 }
 0x41d   : > { %v1203_v49 = vpop.trf.xlu1  ;;  %v1270_v52 = vpop.trf.xlu0 }
 0x41e   : > { %2136 = vmatmul.mubr.msk.bf16.vlgmr.msra.gmra.mrb[24].mxu0 %vm1013_vm6, %v1203_v49 }
 0x41f   : > { %2146 = vmatpush3.bf16.msra.mxu0 %v1354_v53  ;;  %2147 = vmatprep.mubr.msk.bf16.mxu0 %vm2287_vm2, %v2286_v50 }
 0x420   : > { %2157 = vmatprep.subr.bf16.mxu0 %v2286_v50 }
 0x421   : > { %v1337_v56 = vpop.trf.xlu0  ;;  %v1404_v1 = vpop.trf.xlu1 }
 0x422   : > { %2142 = vmatmul.mubr.msk.bf16.vlgmr.msra.gmra.mrb[24].mxu1 %vm1013_vm6, %v1270_v52 }
 0x423   : > { %2152 = vmatpush3.bf16.msra.mxu1 %v1421_v55  ;;  %2153 = vmatprep.mubr.msk.bf16.mxu1 %vm2287_vm2, %v2286_v50 }
 0x425   : > { %v1471_v10 = vpop.trf.xlu0 }
 0x426   : > { %2148 = vmatmul.mubr.msk.bf16.vlgmr.msra.gmra.mrb[28].mxu0 %vm1013_vm6, %v1337_v56 }
 0x427   : > { %2158 = vmatpush3.bf16.msra.mxu0 %v1488_v63  ;;  %2159 = vmatprep.mubr.msk.bf16.mxu0 %vm2287_vm2, %v2286_v50 }
 0x42a   : > { %2154 = vmatmul.mubr.msk.bf16.vlgmr.msra.gmra.mrb[28].mxu1 %vm1013_vm6, %v1404_v1 }
 0x42e   : > { %2160 = vmatmul.mubr.msk.bf16.vlgmr.msra.gmra.mrb[32].mxu0 %vm1013_vm6, %v1471_v10 }
 0x431   : > { %v1011_v11 = vpop.permute.xlu1 %1010 }
 0x435   : > { %v1147_v25 = vpop.permute.xlu1 %1146 }
 0x439   : > { %v1214_v34 = vpop.permute.xlu1 %1213 }
 0x43a   : > { %v1080_v18 = vpop.permute.xlu0 %1079 }
 0x43d   : > { %v1348_v26 = vpop.permute.xlu1 %1347 }
 0x43e   : > { %v1281_v38 = vpop.permute.xlu0 %1280 }
 0x441   : > { %v1482_v60 = vpop.permute.xlu1 %1481 }
 0x442   : > { %v1415_v47 = vpop.permute.xlu0 %1414 }
 0x4c6   : > { %v1055_v12 = vpop.f32.mrb[16].mxu1 }
 0x4c7   : > { %v2613_v13 = vadd.f32 %v1055_v12, %v1011_v11  ;;  %v2119_v14 = vpop.f32.mrb[17].mxu1 }
 0x4c8   : > { %v1058_v15 = vpop.f32.mrb[18].mxu1 }
 0x4c9   : > { %v1531_v16 = vsel %vm1530_vm7, %v2613_v13, 0.0  ;;  %v2120_v17 = vpop.f32.mrb[19].mxu1 }
 0x4ca   : > { %1532 = vadd.xlane.f32.xlu0 %v1531_v16  ;;  %v1122_v19 = vpop.f32.mrb[20].mxu0 }
 0x4cb   : > { %v1123_v50 = vadd.f32 %v1122_v19, %v1080_v18  ;;  %v2125_v20 = vpop.f32.mrb[21].mxu0 }
 0x4cc   : > { %v1125_v21 = vpop.f32.mrb[22].mxu0 }
 0x4cd   : > { %v1534_v22 = vsel %vm1530_vm7, %v1123_v50, 0.0  ;;  %v2126_v24 = vpop.f32.mrb[23].mxu0 }
 0x4ce   : > { %1535 = vadd.xlane.f32.xlu1 %v1534_v22 }
 0x4ed   : > { %v1189_v27 = vpop.f32.mrb[20].mxu1 }
 0x4ee   : > { %v1190_v28 = vadd.f32 %v1189_v27, %v1147_v25  ;;  %v2131_v30 = vpop.f32.mrb[21].mxu1 }
 0x4ef   : > { %v1192_v31 = vpop.f32.mrb[22].mxu1 }
 0x4f0   : > { %v1537_v32 = vsel %vm1530_vm7, %v1190_v28, 0.0  ;;  %v2132_v59 = vpop.f32.mrb[23].mxu1 }
 0x4f1   : > { %1538 = vadd.xlane.f32.xlu0 %v1537_v32  ;;  %v1256_v0 = vpop.f32.mrb[24].mxu0 }
 0x4f2   : > { %v1257_v35 = vadd.f32 %v1256_v0, %v1214_v34  ;;  %v2137_v4 = vpop.f32.mrb[25].mxu0 }
 0x4f3   : > { %v1259_v36 = vpop.f32.mrb[26].mxu0 }
 0x4f4   : > { %v2138_v37 = vpop.f32.mrb[27].mxu0  ;;  %v1540_v61 = vsel %vm1530_vm7, %v1257_v35, 0.0 }
 0x4f5   : > { %v1323_v7 = vpop.f32.mrb[24].mxu1  ;;  %1541 = vadd.xlane.f32.xlu0 %v1540_v61 }
 0x4f6   : > { %v1324_v40 = vadd.f32 %v1323_v7, %v1281_v38  ;;  %v2143_v9 = vpop.f32.mrb[25].mxu1 }
 0x4f7   : > { %v1326_v5 = vpop.f32.mrb[26].mxu1 }
 0x4f8   : > { %v2144_v41 = vpop.f32.mrb[27].mxu1  ;;  %v1543_v8 = vsel %vm1530_vm7, %v1324_v40, 0.0 }
 0x4f9   : > { %1544 = vadd.xlane.f32.xlu1 %v1543_v8  ;;  %v1390_v42 = vpop.f32.mrb[28].mxu0 }
 0x4fa   : > { %v1391_v43 = vadd.f32 %v1390_v42, %v1348_v26  ;;  %v2149_v33 = vpop.f32.mrb[29].mxu0 }
 0x4fb   : > { %v1393_v44 = vpop.f32.mrb[30].mxu0 }
 0x4fc   : > { %v2150_v46 = vpop.f32.mrb[31].mxu0  ;;  %v1546_v45 = vsel %vm1530_vm7, %v1391_v43, 0.0 }
 0x4fd   : > { %v1457_v48 = vpop.f32.mrb[28].mxu1  ;;  %1547 = vadd.xlane.f32.xlu0 %v1546_v45 }
 0x4fe   : > { %v1458_v51 = vadd.f32 %v1457_v48, %v1415_v47  ;;  %v2155_v39 = vpop.f32.mrb[29].mxu1 }
 0x4ff   : > { %v1460_v54 = vpop.f32.mrb[30].mxu1 }
 0x500   : > { %v2156_v58 = vpop.f32.mrb[31].mxu1  ;;  %v1549_v57 = vsel %vm1530_vm7, %v1458_v51, 0.0 }
 0x501   : > { %1550 = vadd.xlane.f32.xlu1 %v1549_v57  ;;  %v1524_v62 = vpop.f32.mrb[32].mxu0 }
 0x502   : > { %v1525_v2 = vadd.f32 %v1524_v62, %v1482_v60  ;;  %v2161_v3 = vpop.f32.mrb[33].mxu0 }
 0x503   : > { %v1527_v6 = vpop.f32.mrb[34].mxu0 }
 0x504   : > { %v2162_v49 = vpop.f32.mrb[35].mxu0  ;;  %v1552_v52 = vsel %vm1530_vm7, %v1525_v2, 0.0 }
 0x505   : > { %1553 = vadd.xlane.f32.xlu0 %v1552_v52  ;;  %v2009_v52 = vld [vmem:[%s2734_s3] ss:$0 sm:$0xff] }
 0x557   : > { %v1533_v53 = vpop.xlane.xlu0 %1532 }
 0x558   : > { %v1556_v55 = vmul.f32 0.03125, %v1533_v53 }
 0x55a   : > { %v2625_v56 = vsub.f32 %v2613_v13, %v1556_v55 }
 0x55b   : > { %v1536_v63 = vpop.xlane.xlu1 %1535 }
 0x55c   : > { %v1557_v1 = vmul.f32 0.03125, %v1536_v63  ;;  %v1572_v10 = vmul.f32 %v2625_v56, %v2625_v56 }
 0x55e   : > { %v2629_v11 = vsub.f32 %v1123_v50, %v1557_v1  ;;  %v1580_v12 = vsel %vm1530_vm7, %v1572_v10, 0.0 }
 0x55f   : > { %1581 = vadd.xlane.f32.xlu1 %v1580_v12 }
 0x560   : > { %v1573_v14 = vmul.f32 %v2629_v11, %v2629_v11 }
 0x562   : > { %v1583_v15 = vsel %vm1530_vm7, %v1573_v14, 0.0 }
 0x563   : > { %1584 = vadd.xlane.f32.xlu0 %v1583_v15  ;;  %v2010_v15 = vld [vmem:[%s2735_s4] ss:$0 sm:$0xff] }
 0x57e   : > { %v1539_v16 = vpop.xlane.xlu0 %1538 }
 0x57f   : > { %v1558_v17 = vmul.f32 0.03125, %v1539_v16 }
 0x581   : > { %v2635_v13 = vsub.f32 %v1190_v28, %v1558_v17 }
 0x582   : > { %v1542_v18 = vpop.xlane.xlu0 %1541 }
 0x583   : > { %v1559_v19 = vmul.f32 0.03125, %v1542_v18  ;;  %v1574_v20 = vmul.f32 %v2635_v13, %v2635_v13 }
 0x585   : > { %v2639_v50 = vsub.f32 %v1257_v35, %v1559_v19  ;;  %v1586_v21 = vsel %vm1530_vm7, %v1574_v20, 0.0 }
 0x586   : > { %1587 = vadd.xlane.f32.xlu1 %v1586_v21  ;;  %v1545_v22 = vpop.xlane.xlu1 %1544 }
 0x587   : > { %v1560_v24 = vmul.f32 0.03125, %v1545_v22  ;;  %v1575_v25 = vmul.f32 %v2639_v50, %v2639_v50 }
 0x589   : > { %v2644_v27 = vsub.f32 %v1324_v40, %v1560_v24  ;;  %v1589_v28 = vsel %vm1530_vm7, %v1575_v25, 0.0 }
 0x58a   : > { %v1548_v30 = vpop.xlane.xlu0 %1547  ;;  %1590 = vadd.xlane.f32.xlu0 %v1589_v28 }
 0x58b   : > { %v1561_v31 = vmul.f32 0.03125, %v1548_v30  ;;  %v1576_v32 = vmul.f32 %v2644_v27, %v2644_v27 }
 0x58d   : > { %v2649_v59 = vsub.f32 %v1391_v43, %v1561_v31  ;;  %v1592_v34 = vsel %vm1530_vm7, %v1576_v32, 0.0 }
 0x58e   : > { %1593 = vadd.xlane.f32.xlu1 %v1592_v34  ;;  %v1551_v0 = vpop.xlane.xlu1 %1550 }
 0x58f   : > { %v1562_v35 = vmul.f32 0.03125, %v1551_v0  ;;  %v1577_v4 = vmul.f32 %v2649_v59, %v2649_v59 }
 0x591   : > { %v2654_v36 = vsub.f32 %v1458_v51, %v1562_v35  ;;  %v1595_v37 = vsel %vm1530_vm7, %v1577_v4, 0.0 }
 0x592   : > { %1596 = vadd.xlane.f32.xlu0 %v1595_v37  ;;  %v1554_v61 = vpop.xlane.xlu0 %1553 }
 0x593   : > { %v1563_v38 = vmul.f32 0.03125, %v1554_v61  ;;  %v1578_v7 = vmul.f32 %v2654_v36, %v2654_v36 }
 0x595   : > { %v2659_v40 = vsub.f32 %v1525_v2, %v1563_v38  ;;  %v1598_v9 = vsel %vm1530_vm7, %v1578_v7, 0.0 }
 0x596   : > { %1599 = vadd.xlane.f32.xlu1 %v1598_v9 }
 0x597   : > { %v1579_v5 = vmul.f32 %v2659_v40, %v2659_v40 }
 0x599   : > { %v1601_v41 = vsel %vm1530_vm7, %v1579_v5, 0.0 }
 0x59a   : > { %1602 = vadd.xlane.f32.xlu0 %v1601_v41 }
 0x5ec   : > { %v1582_v8 = vpop.xlane.xlu1 %1581 }
 0x5ed   : > { %v1604_v26 = vmul.f32 0.03125, %v1582_v8 }
 0x5ef   : > { %v1612_v43 = vadd.f32 1e-05, %v1604_v26 }
 0x5f0   : > { %v1585_v42 = vpop.xlane.xlu0 %1584 }
 0x5f1   : > { %v1605_v33 = vmul.f32 0.03125, %v1585_v42  ;;  %2228 = vrsqrt.f32 %v1612_v43 }
 0x5f3   : > { %v1613_v45 = vadd.f32 1e-05, %v1605_v33 }
 0x5fb   : > { %v2229_v60 = vpop.eup %2228 }
 0x5fc   : > { %v1628_v6 = vmul.f32 %v2229_v60, %v2625_v56 }
 0x5fe   : > { %v1643_v12 = vmul.f32 %v2009_v52, %v1628_v6 }
 0x600   : > { %v1658_v21 = vadd.f32 %v2010_v15, %v1643_v12 }
 0x602   : > { %v1674_v32 = vmin.f32 %v1658_v21, 0.0  ;;  %vm1666_vm9 = vcmp.gt.f32.partialorder %v1658_v21, 0.0 }
 0x613   : > { %v1588_v44 = vpop.xlane.xlu1 %1587 }
 0x614   : > { %v1606_v46 = vmul.f32 0.03125, %v1588_v44 }
 0x616   : > { %v1614_v47 = vadd.f32 1e-05, %v1606_v46 }
 0x617   : > { %v1591_v48 = vpop.xlane.xlu0 %1590 }
 0x618   : > { %2230 = vrsqrt.f32 %v1614_v47  ;;  %v1607_v51 = vmul.f32 0.03125, %v1591_v48 }
 0x619   : > { %2232 = vrsqrt.f32 %v1613_v45 }
 0x61a   : > { %v1615_v39 = vadd.f32 1e-05, %v1607_v51 }
 0x61b   : > { %v1594_v54 = vpop.xlane.xlu1 %1593 }
 0x61c   : > { %2234 = vrsqrt.f32 %v1615_v39  ;;  %v1608_v58 = vmul.f32 0.03125, %v1594_v54 }
 0x61e   : > { %v1616_v57 = vadd.f32 1e-05, %v1608_v58 }
 0x61f   : > { %v1597_v62 = vpop.xlane.xlu0 %1596 }
 0x620   : > { %2236 = vrsqrt.f32 %v1616_v57  ;;  %v1609_v2 = vmul.f32 0.03125, %v1597_v62 }
 0x622   : > { %v2231_v3 = vpop.eup %2230  ;;  %v1617_v49 = vadd.f32 1e-05, %v1609_v2 }
 0x623   : > { %v1600_v53 = vpop.xlane.xlu1 %1599  ;;  %v2233_v55 = vpop.eup %2232  ;;  %v1630_v63 = vmul.f32 %v2231_v3, %v2635_v13 }
 0x624   : > { %2238 = vrsqrt.f32 %v1617_v49  ;;  %v1610_v1 = vmul.f32 0.03125, %v1600_v53  ;;  %v1629_v56 = vmul.f32 %v2233_v55, %v2629_v11 }
 0x625   : > { %v1645_v17 = vmul.f32 %v2009_v52, %v1630_v63 }
 0x626   : > { %v2235_v10 = vpop.eup %2234  ;;  %v1618_v14 = vadd.f32 1e-05, %v1610_v1  ;;  %v1644_v22 = vmul.f32 %v2009_v52, %v1629_v56 }
 0x627   : > { %v1603_v16 = vpop.xlane.xlu0 %1602  ;;  %v1631_v18 = vmul.f32 %v2235_v10, %v2639_v50  ;;  %v2676_v25 = vadd.f32 %v2010_v15, %v1645_v17 }
 0x628   : > { %2240 = vrsqrt.f32 %v1618_v14  ;;  %v1611_v19 = vmul.f32 0.03125, %v1603_v16  ;;  %v2678_v11 = vadd.f32 %v2010_v15, %v1644_v22 }
 0x629   : > { %v1646_v28 = vmul.f32 %v2009_v52, %v1631_v18  ;;  %v1676_v0 = vmin.f32 %v2676_v25, 0.0  ;;  %vm1668_vm10 = vcmp.gt.f32.partialorder %v2676_v25, 0.0 }
 0x62a   : > { %v2237_v20 = vpop.eup %2236  ;;  %v1619_v13 = vadd.f32 1e-05, %v1611_v19  ;;  %v1675_v38 = vmin.f32 %v2678_v11, 0.0  ;;  %vm1667_vm13 = vcmp.gt.f32.partialorder %v2678_v11, 0.0 }
 0x62b   : > { %v1632_v24 = vmul.f32 %v2237_v20, %v2644_v27  ;;  %v2682_v35 = vadd.f32 %v2010_v15, %v1646_v28  ;;  %v1682_v27 = vmul.f32 1.442695, %v1674_v32  ;;  %v1686_v41 = vmul.f32 1.442695, %v1676_v0 }
 0x62c   : > { %2242 = vrsqrt.f32 %v1619_v13  ;;  %v1684_v43 = vmul.f32 1.442695, %v1675_v38 }
 0x62d   : > { %v1647_v30 = vmul.f32 %v2009_v52, %v1632_v24  ;;  %v1677_v8 = vmin.f32 %v2682_v35, 0.0  ;;  %vm1669_vm14 = vcmp.gt.f32.partialorder %v2682_v35, 0.0 }
 0x62e   : > { %v2239_v31 = vpop.eup %2238 }
 0x62f   : > { %v1662_v34 = vadd.f32 %v2010_v15, %v1647_v30  ;;  %v1633_v50 = vmul.f32 %v2239_v31, %v2649_v59  ;;  %v1688_v45 = vmul.f32 1.442695, %v1677_v8 }
 0x631   : > { %v1678_v4 = vmin.f32 %v1662_v34, 0.0  ;;  %v1648_v37 = vmul.f32 %v2009_v52, %v1633_v50  ;;  %vm1670_vm8 = vcmp.gt.f32.partialorder %v1662_v34, 0.0  ;;  %v2291_v50 = vmov 0  }
 0x632   : > { %v2241_v61 = vpop.eup %2240 }
 0x633   : > { %v1690_v7 = vmul.f32 1.442695, %v1678_v4  ;;  %v1663_v9 = vadd.f32 %v2010_v15, %v1648_v37  ;;  %v1634_v5 = vmul.f32 %v2241_v61, %v2654_v36 }
 0x635   : > { %2244 = vpow2.f32 %v1690_v7  ;;  %v1679_v26 = vmin.f32 %v1663_v9, 0.0  ;;  %v1649_v59 = vmul.f32 %v2009_v52, %v1634_v5  ;;  %vm1671_vm11 = vcmp.gt.f32.partialorder %v1663_v9, 0.0 }
 0x636   : > { %v2243_v42 = vpop.eup %2242  ;;  %2246 = vpow2.f32 %v1682_v27 }
 0x637   : > { %v1692_v33 = vmul.f32 1.442695, %v1679_v26  ;;  %v1664_v44 = vadd.f32 %v2010_v15, %v1649_v59  ;;  %v1635_v46 = vmul.f32 %v2243_v42, %v2659_v40  ;;  %2248 = vpow2.f32 %v1686_v41 }
 0x639   : > { %2250 = vpow2.f32 %v1692_v33  ;;  %v1680_v47 = vmin.f32 %v1664_v44, 0.0  ;;  %v1650_v48 = vmul.f32 %v2009_v52, %v1635_v46  ;;  %vm1672_vm12 = vcmp.gt.f32.partialorder %v1664_v44, 0.0 }
 0x63a   : > { %2252 = vpow2.f32 %v1684_v43 }
 0x63b   : > { %v1694_v36 = vmul.f32 1.442695, %v1680_v47  ;;  %v1665_v51 = vadd.f32 %v2010_v15, %v1650_v48  ;;  %2254 = vpow2.f32 %v1688_v45 }
 0x63d   : > { %2256 = vpow2.f32 %v1694_v36  ;;  %v1681_v39 = vmin.f32 %v1665_v51, 0.0  ;;  %vm1673_vm15 = vcmp.gt.f32.partialorder %v1665_v51, 0.0 }
 0x63f   : > { %v2245_v54 = vpop.eup %2244  ;;  %v1696_v58 = vmul.f32 1.442695, %v1681_v39 }
 0x640   : > { %v2247_v57 = vpop.eup %2246  ;;  %v2015_v62 = vadd.f32 -1.0, %v2245_v54 }
 0x641   : > { %2258 = vpow2.f32 %v1696_v58  ;;  %v2249_v60 = vpop.eup %2248  ;;  %v2011_v3 = vadd.f32 -1.0, %v2247_v57 }
 0x642   : > { %v2013_v49 = vadd.f32 -1.0, %v2249_v60  ;;  %v1710_v53 = vsel %vm1670_vm8, %v1662_v34, %v2015_v62 }
 0x643   : > { %v2251_v2 = vpop.eup %2250  ;;  %v1706_v63 = vsel %vm1666_vm9, %v1658_v21, %v2011_v3 }
 0x644   : > { %v2253_v40 = vpop.eup %2252  ;;  %v2016_v52 = vadd.f32 -1.0, %v2251_v2  ;;  %v2019_v12 = vpack.c.bf16 %v1710_v53, %v1706_v63  ;;  %v1708_v14 = vsel %vm1668_vm10, %v2676_v25, %v2013_v49 }
 0x645   : > { %v2255_v6 = vpop.eup %2254  ;;  %v2012_v1 = vadd.f32 -1.0, %v2253_v40 }
 0x646   : > { %v2014_v15 = vadd.f32 -1.0, %v2255_v6  ;;  %v1711_v56 = vsel %vm1671_vm11, %v1663_v9, %v2016_v52  ;;  %v1729_v21 = vrot.slane %v2019_v12, %v2362_v23 }
 0x647   : > { %v2257_v55 = vpop.eup %2256  ;;  %v1707_v19 = vsel %vm1667_vm13, %v2678_v11, %v2012_v1 }
 0x648   : > { %v2017_v10 = vadd.f32 -1.0, %v2257_v55  ;;  %v2021_v13 = vpack.c.bf16 %v1711_v56, %v1707_v19  ;;  %v1709_v24 = vsel %vm1669_vm14, %v2682_v35, %v2014_v15 }
 0x64a   : > { %v1712_v16 = vsel %vm1672_vm12, %v1664_v44, %v2017_v10  ;;  %v1754_v31 = vrot.slane %v2021_v13, %v2362_v23 }
 0x64b   : > { %v2259_v17 = vpop.eup %2258  ;;  %v2020_v18 = vpack.c.bf16 %v1712_v16, %v1708_v14 }
 0x64c   : > { %v2018_v20 = vadd.f32 -1.0, %v2259_v17 }
 0x64d   : > { %v1737_v22 = vrot.slane %v2020_v18, %v2362_v23 }
 0x64e   : > { %v1713_v25 = vsel %vm1673_vm15, %v1665_v51, %v2018_v20 }
 0x64f   : > { %v2022_v28 = vpack.c.bf16 %v1713_v25, %v1709_v24  ;;  %v1738_v30 = vcombine.low %v1729_v21, %v1737_v22 }
 0x651   : > { %v1762_v32 = vrot.slane %v2022_v28, %v2362_v23  ;;  %v1745_v11 = vrot.slane %v1738_v30, %v2366_v29 }
 0x653   : > { %v1763_v34 = vcombine.low %v1754_v31, %v1762_v32  ;;  %v1746_v0 = vcombine.high %v1745_v11, %v2291_v50  ;;  %v1775_v27 = vshrl.u32 %v1745_v11, 16 }
 0x655   : > { %v1770_v4 = vrot.slane %v1763_v34, %v2366_v29  ;;  %v1781_v9 = vshrl.u32 %v1746_v0, 16 }
 0x657   : > { %v1771_v37 = vcombine.high %v1770_v4, %v2291_v50  ;;  %v1774_v61 = vpack.i.b16 %v1770_v4, %v1745_v11  ;;  %v1776_v38 = vshrl.u32 %v1770_v4, 16 }
 0x659   : > { %v1777_v7 = vpack.i.b16 %v1776_v38, %v1775_v27  ;;  %v1780_v35 = vpack.i.b16 %v1771_v37, %v1746_v0  ;;  %v1782_v5 = vshrl.u32 %v1771_v37, 16  ;;  %v1791_v8 = vrot.slane %v1774_v61, %v2362_v23 }
 0x65b   : > { %v1783_v41 = vpack.i.b16 %v1782_v5, %v1781_v9  ;;  %v1799_v26 = vrot.slane %v1780_v35, %v2362_v23  ;;  %v1825_v42 = vrot.slane %v1777_v7, %v2362_v23 }
 0x65d   : > { %v1800_v59 = vcombine.low %v1791_v8, %v1799_v26  ;;  %v1833_v43 = vrot.slane %v1783_v41, %v2362_v23  ;;  %v1801_v33 = vcombine.high %v1791_v8, %v1799_v26 }
 0x65f   : > { %v1808_v44 = vrot.slane %v1800_v59, %v2366_v29  ;;  %v1834_v46 = vcombine.low %v1825_v42, %v1833_v43  ;;  %v1835_v45 = vcombine.high %v1825_v42, %v1833_v43  ;;  %v1815_v36 = vrot.slane %v1801_v33, %v2366_v29 }
 0x661   : > { %v1842_v47 = vrot.slane %v1834_v46, %v2366_v29  ;;  %v1849_v48 = vrot.slane %v1835_v45, %v2366_v29  ;;  %v1855_v51 = vshrl.u32 %v1808_v44, 16  ;;  %v1816_v54 = vcombine.high %v1808_v44, %v2291_v50 }
 0x662   : > { %v1867_v40 = vshrl.u32 %v1815_v36, 16  ;;  %v1817_v6 = vcombine.high %v1815_v36, %v2291_v50 }
 0x663   : > { %v1856_v39 = vshrl.u32 %v1842_v47, 16  ;;  %v1850_v58 = vcombine.high %v1842_v47, %v2291_v50  ;;  %v1854_v57 = vpack.i.b16 %v1842_v47, %v1808_v44  ;;  %v1866_v60 = vpack.i.b16 %v1849_v48, %v1815_v36 }
 0x664   : > { %v1868_v23 = vshrl.u32 %v1849_v48, 16  ;;  %v1851_v3 = vcombine.high %v1849_v48, %v2291_v50  ;;  %v1861_v52 = vshrl.u32 %v1816_v54, 16  ;;  %v1873_v1 = vshrl.u32 %v1817_v6, 16 }
 0x665   : > { %v1857_v62 = vpack.i.b16 %v1856_v39, %v1855_v51  ;;  %v1860_v2 = vpack.i.b16 %v1850_v58, %v1816_v54  ;;  %v1862_v29 = vshrl.u32 %v1850_v58, 16 }
 0x666   : > { %v1869_v49 = vpack.i.b16 %v1868_v23, %v1867_v40  ;;  %v1872_v53 = vpack.i.b16 %v1851_v3, %v1817_v6  ;;  %v1874_v63 = vshrl.u32 %v1851_v3, 16 }
 0x667   : > { %1876 = vrot.lane.b32.xlu1 %v1857_v62, %s2290_s17  ;;  %1878 = vrot.lane.b32.xlu0 %v1860_v2, %s2289_s16  ;;  %v1863_v55 = vpack.i.b16 %v1862_v29, %v1861_v52 }
 0x668   : > { %v1875_v10 = vpack.i.b16 %v1874_v63, %v1873_v1 }
 0x66b   : > { %1882 = vrot.lane.b32.xlu1 %v1869_v49, %s2290_s17  ;;  %1884 = vrot.lane.b32.xlu0 %v1872_v53, %s2289_s16 }
 0x66f   : > { %1880 = vrot.lane.b32.xlu1 %v1863_v55, %s2288_s15 }
 0x673   : > { %1886 = vrot.lane.b32.xlu1 %v1875_v10, %s2288_s15 }
 0x6d9   : > { %v1877_v12 = vpop.permute.xlu1 %1876  ;;  %v1879_v14 = vpop.permute.xlu0 %1878 }
 0x6da   : > { %v1890_v16 = vsel %vm497_vm3, %v1854_v57, %v1877_v12 }
 0x6db   : > { %v1893_v19 = vsel %vm1891_vm0, %v1890_v16, %v1879_v14 }
 0x6dd   : > { %v1883_v15 = vpop.permute.xlu1 %1882  ;;  %v1885_v18 = vpop.permute.xlu0 %1884 }
 0x6de   : > { %v1899_v17 = vsel %vm497_vm3, %v1866_v60, %v1883_v15 }
 0x6df   : > { %v1901_v20 = vsel %vm1891_vm0, %v1899_v17, %v1885_v18 }
 0x6e1   : > { %v1881_v56 = vpop.permute.xlu1 %1880 }
 0x6e2   : > { %v1896_v13 = vsel %vm1894_vm1, %v1893_v19, %v1881_v56 }
 0x6e5   : > { %v1887_v21 = vpop.permute.xlu1 %1886 }
 0x6e6   : > { %v1903_v22 = vsel %vm1894_vm1, %v1901_v20, %v1887_v21 }
 0x6e7   : > { %v1906_v24 = vcombine.low %v1896_v13, %v1903_v22 }
 0x6e9   : > { %2023 = vst.sshfl [vmem:[%s277_s29] sm:$0x33 pattern:$0x76325410] %v1906_v24 }
 0x6ea PF: > { %p12_p9 = scmp.ge.s32.totalorder %s2339_s22, 4   ;;  %s2737_s18 = smov %s2278_s19 }
 0x6eb   : > { %s2738_s19 = smov %s2348_s25  ;;  %s2739_s20 = smov %s2339_s22 }
 0x6ec   :  { %14 = sbr.rel (!%p12_p9) target bundleno = 2 (0x2), region = 116 }

</bundles_post_ra>
